<compile_context>
chip_gen: v7x
topology: tpu7x:2x2x1
jax: 0.10.0
libtpu: 0.0.40
codegen_flags: <defaults>
</compile_context>

<pallas_src>
import jax
import jax.numpy as jnp
from jax import lax
from jax.experimental import pallas as pl
from jax.experimental.pallas import tpu as pltpu


def _round_up(n, m):
    return ((n + m - 1) // m) * m


def bilstm_kernel(x_ref,        # (T, Bp, D)
                  wih_ref,      # (D, 8H)   [W_ih_f^T | W_ih_b^T]
                  whh_ref,      # (H, 8H)   [W_hh_f^T | W_hh_b^T]
                  b_ref,        # (1, 8H)   [b_f | b_b]
                  wemb_ref,     # (2H, OUT_PAD)
                  bemb_ref,     # (1, OUT_PAD)
                  out_ref,      # (T, Bp, OUT_PAD)
                  g_ref,        # scratch (T, Bp, 8H): pre-gates, both directions
                  h_ref):       # scratch (T, Bp, 2H): [h_fwd | h_bwd]
    T, Bp, D = x_ref.shape
    H = whh_ref.shape[0]

    # ---- fused input projection: ONE matmul for both directions ----
    x2 = x_ref[...].reshape(T * Bp, D)
    g_ref[...] = (jnp.dot(x2, wih_ref[...], preferred_element_type=jnp.float32)
                  + b_ref[...]).reshape(T, Bp, 8 * H)

    # recurrent weights loaded once, outside the unrolled loop
    whh = whh_ref[...]                                   # (H, 8H)

    h0 = jnp.zeros((2 * Bp, H), jnp.float32)             # rows 0:Bp fwd, Bp:2Bp bwd
    c0 = jnp.zeros((2 * Bp, H), jnp.float32)

    def body(s, carry):
        h_both, c_both = carry
        t = s                   # forward time index
        tb = T - 1 - s          # backward time index

        # single fused MXU push for both directions; fwd result = top-left
        # corner, bwd result = bottom-right corner (off-corner FLOPs are free
        # filler on the mostly idle MXU tile).
        r = jnp.dot(h_both, whh, preferred_element_type=jnp.float32)   # (2Bp, 8H)
        gf = g_ref[t, :, 0:4 * H] + r[0:Bp, 0:4 * H]                   # (Bp, 4H)
        gb = g_ref[tb, :, 4 * H:8 * H] + r[Bp:2 * Bp, 4 * H:8 * H]     # (Bp, 4H)
        g = jnp.concatenate([gf, gb], axis=0)                          # (2Bp, 4H)

        # full-tile nonlinearities: one sigmoid + one tanh over the whole
        # stacked gate tile, then static slices (gate order i, f, g, o).
        sg = jax.nn.sigmoid(g)
        tg = jnp.tanh(g)
        i = sg[:, 0:H]
        f = sg[:, H:2 * H]
        gc = tg[:, 2 * H:3 * H]
        o = sg[:, 3 * H:4 * H]

        c_new = f * c_both + i * gc
        h_new = o * jnp.tanh(c_new)

        h_ref[t, :, 0:H] = h_new[0:Bp]                   # forward half
        h_ref[tb, :, H:2 * H] = h_new[Bp:2 * Bp]         # backward half
        return (h_new, c_new)

    lax.fori_loop(0, T, body, (h0, c0), unroll=True)

    # ---- fused epilogue: ONE (T*Bp, 2H) @ (2H, OUT_PAD) matmul, lane-dense ----
    h2 = h_ref[...].reshape(T * Bp, 2 * H)
    y = (jnp.dot(h2, wemb_ref[...], preferred_element_type=jnp.float32)
         + bemb_ref[...])
    out_ref[...] = y.reshape(T, Bp, -1).astype(out_ref.dtype)


def bidirectional_lstm(x, params, hidden_dim, out_dim):
    T, B, D = x.shape
    H = hidden_dim
    Bp = _round_up(B, 8)                 # fill f32 sublanes
    OUT_PAD = _round_up(out_dim, 128)    # lane-dense output stores

    # ---- wrapper-side layout plumbing (pad / concat, semantics unchanged) ----
    x_p = jnp.pad(x, ((0, 0), (0, Bp - B), (0, 0)))
    wih_cat = jnp.concatenate([params["wih_f"], params["wih_b"]], axis=1)  # (D, 8H)
    whh_cat = jnp.concatenate([params["whh_f"], params["whh_b"]], axis=1)  # (H, 8H)
    b_cat = jnp.concatenate([params["b_f"], params["b_b"]], axis=1)        # (1, 8H)
    w_emb = jnp.pad(params["w_emb"], ((0, 0), (0, OUT_PAD - out_dim)))     # (2H, OUT_PAD)
    b_emb = jnp.pad(params["b_emb"], ((0, 0), (0, OUT_PAD - out_dim)))     # (1, OUT_PAD)

    # TODO(synk): for production T/B/H, tile T into grid chunks ('arbitrary'
    # axis, h/c carried in persistent VMEM scratch sized to v7x's 64 MiB),
    # cast the bulk matmul operands to bf16 (keep h/c/gates f32), and on v7x
    # split the two directions across the two TensorCores; unnecessary at
    # these sizes — everything fits VMEM comfortably.
    out_p = pl.pallas_call(
        bilstm_kernel,
        out_shape=jax.ShapeDtypeStruct((T, Bp, OUT_PAD), jnp.float32),
        in_specs=[pl.BlockSpec(memory_space=pltpu.MemorySpace.VMEM)] * 6,
        out_specs=pl.BlockSpec(memory_space=pltpu.MemorySpace.VMEM),
        scratch_shapes=[pltpu.VMEM((T, Bp, 8 * H), jnp.float32),
                        pltpu.VMEM((T, Bp, 2 * H), jnp.float32)],
    )(x_p, wih_cat, whh_cat, b_cat, w_emb, b_emb)
    return out_p[:, :B, :out_dim]


# ---------------- pure-JAX reference (for correctness check) ----------------
def _lstm_scan_ref(x, wih_T, whh_T, b, H):
    B = x.shape[1]

    def step(carry, xt):
        h, c = carry
        gates = xt @ wih_T + h @ whh_T + b
        i = jax.nn.sigmoid(gates[:, 0:H])
        f = jax.nn.sigmoid(gates[:, H:2 * H])
        g = jnp.tanh(gates[:, 2 * H:3 * H])
        o = jax.nn.sigmoid(gates[:, 3 * H:4 * H])
        c = f * c + i * g
        h = o * jnp.tanh(c)
        return (h, c), h

    init = (jnp.zeros((B, H), jnp.float32), jnp.zeros((B, H), jnp.float32))
    _, hs = lax.scan(step, init, x)
    return hs  # (T, B, H)


def reference(x, params, hidden_dim):
    H = hidden_dim
    hf = _lstm_scan_ref(x, params["wih_f"], params["whh_f"], params["b_f"], H)
    hb = _lstm_scan_ref(x[::-1], params["wih_b"], params["whh_b"], params["b_b"], H)[::-1]
    h = jnp.concatenate([hf, hb], axis=-1)
    return h @ params["w_emb"] + params["b_emb"]


def init_params(key, in_dim, hidden_dim, out_dim):
    """Deterministic synthetic init, PyTorch-style U(-1/sqrt(H), 1/sqrt(H))."""
    H = hidden_dim
    k = 1.0 / jnp.sqrt(jnp.float32(H))
    keys = jax.random.split(key, 10)

    def u(kk, shape):
        return jax.random.uniform(kk, shape, jnp.float32, -k, k)

    # PyTorch parameter shapes: weight_ih (4H, D), weight_hh (4H, H), biases (4H,)
    wih_f = u(keys[0], (4 * H, in_dim))
    whh_f = u(keys[1], (4 * H, H))
    bih_f = u(keys[2], (4 * H,))
    bhh_f = u(keys[3], (4 * H,))
    wih_b = u(keys[4], (4 * H, in_dim))
    whh_b = u(keys[5], (4 * H, H))
    bih_b = u(keys[6], (4 * H,))
    bhh_b = u(keys[7], (4 * H,))
    # Linear: weight (out, 2H), bias (out,)
    w_emb = u(keys[8], (out_dim, 2 * H))
    b_emb = u(keys[9], (out_dim,))

    return {
        "wih_f": wih_f.T,                        # (D, 4H)
        "whh_f": whh_f.T,                        # (H, 4H)
        "b_f": (bih_f + bhh_f)[None, :],         # (1, 4H)
        "wih_b": wih_b.T,
        "whh_b": whh_b.T,
        "b_b": (bih_b + bhh_b)[None, :],
        "w_emb": w_emb.T,                        # (2H, out)  (fwd rows 0:H, bwd rows H:2H)
        "b_emb": b_emb[None, :],                 # (1, out)
    }


if __name__ == "__main__":
    T, B, in_dim, hidden_dim, out_dim = 8, 2, 16, 32, 16

    key = jax.random.PRNGKey(0)
    kx, kp = jax.random.split(key)
    x = jax.random.normal(kx, (T, B, in_dim), jnp.float32)
    params = init_params(kp, in_dim, hidden_dim, out_dim)

    out = bidirectional_lstm(x, params, hidden_dim, out_dim)
    out = jax.block_until_ready(out)

    ref = jax.block_until_ready(reference(x, params, hidden_dim))
    assert out.shape == (T, B, out_dim)
    assert jnp.allclose(out, ref, atol=1e-4, rtol=1e-4), "mismatch vs reference"

    print("KERNEL_OK")
</pallas_src>

<mosaic_0001>
module attributes {stable_mosaic.version = 11 : i64} {
  func.func @bilstm_kernel(%arg0: memref<8x8x16xf32, #tpu.memory_space<vmem>>, %arg1: memref<16x256xf32, #tpu.memory_space<vmem>>, %arg2: memref<32x256xf32, #tpu.memory_space<vmem>>, %arg3: memref<1x256xf32, #tpu.memory_space<vmem>>, %arg4: memref<64x128xf32, #tpu.memory_space<vmem>>, %arg5: memref<1x128xf32, #tpu.memory_space<vmem>>, %arg6: memref<8x8x128xf32, #tpu.memory_space<vmem>>, %arg7: memref<8x8x256xf32, #tpu.memory_space<vmem>>, %arg8: memref<8x8x64xf32, #tpu.memory_space<vmem>>) attributes {dimension_semantics = [], scalar_prefetch = 0 : i64, scratch_operands = 2 : i64, tpu.core_type = #tpu.core_type<tc>} {
    %c0 = arith.constant 0 : index
    %c0_0 = arith.constant 0 : index
    %c0_1 = arith.constant 0 : index
    %0 = vector.load %arg0[%c0, %c0_0, %c0_1] : memref<8x8x16xf32, #tpu.memory_space<vmem>>, vector<8x8x16xf32>
    %1 = vector.shape_cast %0 : vector<8x8x16xf32> to vector<64x16xf32>
    %c0_2 = arith.constant 0 : index
    %c0_3 = arith.constant 0 : index
    %2 = vector.load %arg1[%c0_2, %c0_3] : memref<16x256xf32, #tpu.memory_space<vmem>>, vector<16x256xf32>
    %cst = arith.constant dense<0.000000e+00> : vector<64x256xf32>
    %3 = tpu.matmul %1, %2, %cst {dimension_numbers = #tpu.dot_dimension_numbers<[1], [0], [0], [1], [0, 0, 1, 1], [], []>} : vector<64x16xf32>, vector<16x256xf32>, vector<64x256xf32> -> vector<64x256xf32>
    %c0_4 = arith.constant 0 : index
    %c0_5 = arith.constant 0 : index
    %4 = vector.load %arg3[%c0_4, %c0_5] : memref<1x256xf32, #tpu.memory_space<vmem>>, vector<1x256xf32>
    %5 = vector.broadcast %4 : vector<1x256xf32> to vector<64x256xf32>
    %6 = arith.addf %3, %5 : vector<64x256xf32>
    %7 = vector.shape_cast %6 : vector<64x256xf32> to vector<8x8x256xf32>
    %c0_6 = arith.constant 0 : index
    %c0_7 = arith.constant 0 : index
    %c0_8 = arith.constant 0 : index
    %8 = vector.load %arg7[%c0_6, %c0_7, %c0_8] : memref<8x8x256xf32, #tpu.memory_space<vmem>>, vector<8x8x256xf32>
    tpu.vector_store %arg7[%c0_6, %c0_7, %c0_8], %7 {strides = array<i32>} : memref<8x8x256xf32, #tpu.memory_space<vmem>>, vector<8x8x256xf32>,
    %c0_9 = arith.constant 0 : index
    %c0_10 = arith.constant 0 : index
    %9 = vector.load %arg2[%c0_9, %c0_10] : memref<32x256xf32, #tpu.memory_space<vmem>>, vector<32x256xf32>
    %cst_11 = arith.constant 0.000000e+00 : f32
    %10 = vector.broadcast %cst_11 : f32 to vector<16x32xf32>
    %cst_12 = arith.constant 0.000000e+00 : f32
    %11 = vector.broadcast %cst_12 : f32 to vector<16x32xf32>
    %c0_i32 = arith.constant 0 : i32
    %c7_i32 = arith.constant 7 : i32
    %12 = arith.subi %c7_i32, %c0_i32 : i32
    %cst_13 = arith.constant dense<0.000000e+00> : vector<16x256xf32>
    %13 = tpu.matmul %10, %9, %cst_13 {dimension_numbers = #tpu.dot_dimension_numbers<[1], [0], [0], [1], [0, 0, 1, 1], [], []>} : vector<16x32xf32>, vector<32x256xf32>, vector<16x256xf32> -> vector<16x256xf32>
    %14 = arith.index_cast %c0_i32 : i32 to index
    %c0_14 = arith.constant 0 : index
    %c0_15 = arith.constant 0 : index
    %15 = vector.load %arg7[%14, %c0_14, %c0_15] : memref<8x8x256xf32, #tpu.memory_space<vmem>>, vector<1x8x128xf32>
    %16 = vector.shape_cast %15 : vector<1x8x128xf32> to vector<8x128xf32>
    %17 = vector.extract_strided_slice %13 {offsets = [0, 0], sizes = [8, 128], strides = [1, 1]} : vector<16x256xf32> to vector<8x128xf32>
    %18 = arith.addf %16, %17 : vector<8x128xf32>
    %19 = arith.index_cast %12 : i32 to index
    %c0_16 = arith.constant 0 : index
    %c128 = arith.constant 128 : index
    %20 = vector.load %arg7[%19, %c0_16, %c128] : memref<8x8x256xf32, #tpu.memory_space<vmem>>, vector<1x8x128xf32>
    %21 = vector.shape_cast %20 : vector<1x8x128xf32> to vector<8x128xf32>
    %22 = vector.extract_strided_slice %13 {offsets = [8, 128], sizes = [8, 128], strides = [1, 1]} : vector<16x256xf32> to vector<8x128xf32>
    %23 = arith.addf %21, %22 : vector<8x128xf32>
    %24 = tpu.concatenate %18, %23 in 0 : vector<8x128xf32>, vector<8x128xf32> -> vector<16x128xf32>
    %25 = arith.negf %24 : vector<16x128xf32>
    %26 = math.exp %25 : vector<16x128xf32>
    %cst_17 = arith.constant 1.000000e+00 : f32
    %27 = vector.broadcast %cst_17 : f32 to vector<16x128xf32>
    %28 = arith.addf %27, %26 : vector<16x128xf32>
    %29 = arith.divf %27, %28 : vector<16x128xf32>
    %30 = math.tanh %24 : vector<16x128xf32>
    %31 = vector.extract_strided_slice %29 {offsets = [0, 0], sizes = [16, 32], strides = [1, 1]} : vector<16x128xf32> to vector<16x32xf32>
    %32 = vector.extract_strided_slice %29 {offsets = [0, 32], sizes = [16, 32], strides = [1, 1]} : vector<16x128xf32> to vector<16x32xf32>
    %33 = vector.extract_strided_slice %30 {offsets = [0, 64], sizes = [16, 32], strides = [1, 1]} : vector<16x128xf32> to vector<16x32xf32>
    %34 = vector.extract_strided_slice %29 {offsets = [0, 96], sizes = [16, 32], strides = [1, 1]} : vector<16x128xf32> to vector<16x32xf32>
    %35 = arith.mulf %32, %11 : vector<16x32xf32>
    %36 = arith.mulf %31, %33 : vector<16x32xf32>
    %37 = arith.addf %35, %36 : vector<16x32xf32>
    %38 = math.tanh %37 : vector<16x32xf32>
    %39 = arith.mulf %34, %38 : vector<16x32xf32>
    %40 = vector.extract_strided_slice %39 {offsets = [0, 0], sizes = [8, 32], strides = [1, 1]} : vector<16x32xf32> to vector<8x32xf32>
    %41 = arith.index_cast %c0_i32 : i32 to index
    %c0_18 = arith.constant 0 : index
    %c0_19 = arith.constant 0 : index
    %42 = vector.load %arg8[%41, %c0_18, %c0_19] : memref<8x8x64xf32, #tpu.memory_space<vmem>>, vector<1x8x32xf32>
    %43 = vector.shape_cast %42 : vector<1x8x32xf32> to vector<8x32xf32>
    %44 = vector.shape_cast %40 : vector<8x32xf32> to vector<1x8x32xf32>
    tpu.vector_store %arg8[%41, %c0_18, %c0_19], %44 {strides = array<i32>} : memref<8x8x64xf32, #tpu.memory_space<vmem>>, vector<1x8x32xf32>,
    %45 = vector.extract_strided_slice %39 {offsets = [8, 0], sizes = [8, 32], strides = [1, 1]} : vector<16x32xf32> to vector<8x32xf32>
    %46 = arith.index_cast %12 : i32 to index
    %c0_20 = arith.constant 0 : index
    %c32 = arith.constant 32 : index
    %47 = vector.load %arg8[%46, %c0_20, %c32] : memref<8x8x64xf32, #tpu.memory_space<vmem>>, vector<1x8x32xf32>
    %48 = vector.shape_cast %47 : vector<1x8x32xf32> to vector<8x32xf32>
    %49 = vector.shape_cast %45 : vector<8x32xf32> to vector<1x8x32xf32>
    tpu.vector_store %arg8[%46, %c0_20, %c32], %49 {strides = array<i32>} : memref<8x8x64xf32, #tpu.memory_space<vmem>>, vector<1x8x32xf32>,
    %c1_i32 = arith.constant 1 : i32
    %c7_i32_21 = arith.constant 7 : i32
    %50 = arith.subi %c7_i32_21, %c1_i32 : i32
    %cst_22 = arith.constant dense<0.000000e+00> : vector<16x256xf32>
    %51 = tpu.matmul %39, %9, %cst_22 {dimension_numbers = #tpu.dot_dimension_numbers<[1], [0], [0], [1], [0, 0, 1, 1], [], []>} : vector<16x32xf32>, vector<32x256xf32>, vector<16x256xf32> -> vector<16x256xf32>
    %52 = arith.index_cast %c1_i32 : i32 to index
    %c0_23 = arith.constant 0 : index
    %c0_24 = arith.constant 0 : index
    %53 = vector.load %arg7[%52, %c0_23, %c0_24] : memref<8x8x256xf32, #tpu.memory_space<vmem>>, vector<1x8x128xf32>
    %54 = vector.shape_cast %53 : vector<1x8x128xf32> to vector<8x128xf32>
    %55 = vector.extract_strided_slice %51 {offsets = [0, 0], sizes = [8, 128], strides = [1, 1]} : vector<16x256xf32> to vector<8x128xf32>
    %56 = arith.addf %54, %55 : vector<8x128xf32>
    %57 = arith.index_cast %50 : i32 to index
    %c0_25 = arith.constant 0 : index
    %c128_26 = arith.constant 128 : index
    %58 = vector.load %arg7[%57, %c0_25, %c128_26] : memref<8x8x256xf32, #tpu.memory_space<vmem>>, vector<1x8x128xf32>
    %59 = vector.shape_cast %58 : vector<1x8x128xf32> to vector<8x128xf32>
    %60 = vector.extract_strided_slice %51 {offsets = [8, 128], sizes = [8, 128], strides = [1, 1]} : vector<16x256xf32> to vector<8x128xf32>
    %61 = arith.addf %59, %60 : vector<8x128xf32>
    %62 = tpu.concatenate %56, %61 in 0 : vector<8x128xf32>, vector<8x128xf32> -> vector<16x128xf32>
    %63 = arith.negf %62 : vector<16x128xf32>
    %64 = math.exp %63 : vector<16x128xf32>
    %cst_27 = arith.constant 1.000000e+00 : f32
    %65 = vector.broadcast %cst_27 : f32 to vector<16x128xf32>
    %66 = arith.addf %65, %64 : vector<16x128xf32>
    %67 = arith.divf %65, %66 : vector<16x128xf32>
    %68 = math.tanh %62 : vector<16x128xf32>
    %69 = vector.extract_strided_slice %67 {offsets = [0, 0], sizes = [16, 32], strides = [1, 1]} : vector<16x128xf32> to vector<16x32xf32>
    %70 = vector.extract_strided_slice %67 {offsets = [0, 32], sizes = [16, 32], strides = [1, 1]} : vector<16x128xf32> to vector<16x32xf32>
    %71 = vector.extract_strided_slice %68 {offsets = [0, 64], sizes = [16, 32], strides = [1, 1]} : vector<16x128xf32> to vector<16x32xf32>
    %72 = vector.extract_strided_slice %67 {offsets = [0, 96], sizes = [16, 32], strides = [1, 1]} : vector<16x128xf32> to vector<16x32xf32>
    %73 = arith.mulf %70, %37 : vector<16x32xf32>
    %74 = arith.mulf %69, %71 : vector<16x32xf32>
    %75 = arith.addf %73, %74 : vector<16x32xf32>
    %76 = math.tanh %75 : vector<16x32xf32>
    %77 = arith.mulf %72, %76 : vector<16x32xf32>
    %78 = vector.extract_strided_slice %77 {offsets = [0, 0], sizes = [8, 32], strides = [1, 1]} : vector<16x32xf32> to vector<8x32xf32>
    %79 = arith.index_cast %c1_i32 : i32 to index
    %c0_28 = arith.constant 0 : index
    %c0_29 = arith.constant 0 : index
    %80 = vector.load %arg8[%79, %c0_28, %c0_29] : memref<8x8x64xf32, #tpu.memory_space<vmem>>, vector<1x8x32xf32>
    %81 = vector.shape_cast %80 : vector<1x8x32xf32> to vector<8x32xf32>
    %82 = vector.shape_cast %78 : vector<8x32xf32> to vector<1x8x32xf32>
    tpu.vector_store %arg8[%79, %c0_28, %c0_29], %82 {strides = array<i32>} : memref<8x8x64xf32, #tpu.memory_space<vmem>>, vector<1x8x32xf32>,
    %83 = vector.extract_strided_slice %77 {offsets = [8, 0], sizes = [8, 32], strides = [1, 1]} : vector<16x32xf32> to vector<8x32xf32>
    %84 = arith.index_cast %50 : i32 to index
    %c0_30 = arith.constant 0 : index
    %c32_31 = arith.constant 32 : index
    %85 = vector.load %arg8[%84, %c0_30, %c32_31] : memref<8x8x64xf32, #tpu.memory_space<vmem>>, vector<1x8x32xf32>
    %86 = vector.shape_cast %85 : vector<1x8x32xf32> to vector<8x32xf32>
    %87 = vector.shape_cast %83 : vector<8x32xf32> to vector<1x8x32xf32>
    tpu.vector_store %arg8[%84, %c0_30, %c32_31], %87 {strides = array<i32>} : memref<8x8x64xf32, #tpu.memory_space<vmem>>, vector<1x8x32xf32>,
    %c2_i32 = arith.constant 2 : i32
    %c7_i32_32 = arith.constant 7 : i32
    %88 = arith.subi %c7_i32_32, %c2_i32 : i32
    %cst_33 = arith.constant dense<0.000000e+00> : vector<16x256xf32>
    %89 = tpu.matmul %77, %9, %cst_33 {dimension_numbers = #tpu.dot_dimension_numbers<[1], [0], [0], [1], [0, 0, 1, 1], [], []>} : vector<16x32xf32>, vector<32x256xf32>, vector<16x256xf32> -> vector<16x256xf32>
    %90 = arith.index_cast %c2_i32 : i32 to index
    %c0_34 = arith.constant 0 : index
    %c0_35 = arith.constant 0 : index
    %91 = vector.load %arg7[%90, %c0_34, %c0_35] : memref<8x8x256xf32, #tpu.memory_space<vmem>>, vector<1x8x128xf32>
    %92 = vector.shape_cast %91 : vector<1x8x128xf32> to vector<8x128xf32>
    %93 = vector.extract_strided_slice %89 {offsets = [0, 0], sizes = [8, 128], strides = [1, 1]} : vector<16x256xf32> to vector<8x128xf32>
    %94 = arith.addf %92, %93 : vector<8x128xf32>
    %95 = arith.index_cast %88 : i32 to index
    %c0_36 = arith.constant 0 : index
    %c128_37 = arith.constant 128 : index
    %96 = vector.load %arg7[%95, %c0_36, %c128_37] : memref<8x8x256xf32, #tpu.memory_space<vmem>>, vector<1x8x128xf32>
    %97 = vector.shape_cast %96 : vector<1x8x128xf32> to vector<8x128xf32>
    %98 = vector.extract_strided_slice %89 {offsets = [8, 128], sizes = [8, 128], strides = [1, 1]} : vector<16x256xf32> to vector<8x128xf32>
    %99 = arith.addf %97, %98 : vector<8x128xf32>
    %100 = tpu.concatenate %94, %99 in 0 : vector<8x128xf32>, vector<8x128xf32> -> vector<16x128xf32>
    %101 = arith.negf %100 : vector<16x128xf32>
    %102 = math.exp %101 : vector<16x128xf32>
    %cst_38 = arith.constant 1.000000e+00 : f32
    %103 = vector.broadcast %cst_38 : f32 to vector<16x128xf32>
    %104 = arith.addf %103, %102 : vector<16x128xf32>
    %105 = arith.divf %103, %104 : vector<16x128xf32>
    %106 = math.tanh %100 : vector<16x128xf32>
    %107 = vector.extract_strided_slice %105 {offsets = [0, 0], sizes = [16, 32], strides = [1, 1]} : vector<16x128xf32> to vector<16x32xf32>
    %108 = vector.extract_strided_slice %105 {offsets = [0, 32], sizes = [16, 32], strides = [1, 1]} : vector<16x128xf32> to vector<16x32xf32>
    %109 = vector.extract_strided_slice %106 {offsets = [0, 64], sizes = [16, 32], strides = [1, 1]} : vector<16x128xf32> to vector<16x32xf32>
    %110 = vector.extract_strided_slice %105 {offsets = [0, 96], sizes = [16, 32], strides = [1, 1]} : vector<16x128xf32> to vector<16x32xf32>
    %111 = arith.mulf %108, %75 : vector<16x32xf32>
    %112 = arith.mulf %107, %109 : vector<16x32xf32>
    %113 = arith.addf %111, %112 : vector<16x32xf32>
    %114 = math.tanh %113 : vector<16x32xf32>
    %115 = arith.mulf %110, %114 : vector<16x32xf32>
    %116 = vector.extract_strided_slice %115 {offsets = [0, 0], sizes = [8, 32], strides = [1, 1]} : vector<16x32xf32> to vector<8x32xf32>
    %117 = arith.index_cast %c2_i32 : i32 to index
    %c0_39 = arith.constant 0 : index
    %c0_40 = arith.constant 0 : index
    %118 = vector.load %arg8[%117, %c0_39, %c0_40] : memref<8x8x64xf32, #tpu.memory_space<vmem>>, vector<1x8x32xf32>
    %119 = vector.shape_cast %118 : vector<1x8x32xf32> to vector<8x32xf32>
    %120 = vector.shape_cast %116 : vector<8x32xf32> to vector<1x8x32xf32>
    tpu.vector_store %arg8[%117, %c0_39, %c0_40], %120 {strides = array<i32>} : memref<8x8x64xf32, #tpu.memory_space<vmem>>, vector<1x8x32xf32>,
    %121 = vector.extract_strided_slice %115 {offsets = [8, 0], sizes = [8, 32], strides = [1, 1]} : vector<16x32xf32> to vector<8x32xf32>
    %122 = arith.index_cast %88 : i32 to index
    %c0_41 = arith.constant 0 : index
    %c32_42 = arith.constant 32 : index
    %123 = vector.load %arg8[%122, %c0_41, %c32_42] : memref<8x8x64xf32, #tpu.memory_space<vmem>>, vector<1x8x32xf32>
    %124 = vector.shape_cast %123 : vector<1x8x32xf32> to vector<8x32xf32>
    %125 = vector.shape_cast %121 : vector<8x32xf32> to vector<1x8x32xf32>
    tpu.vector_store %arg8[%122, %c0_41, %c32_42], %125 {strides = array<i32>} : memref<8x8x64xf32, #tpu.memory_space<vmem>>, vector<1x8x32xf32>,
    %c3_i32 = arith.constant 3 : i32
    %c7_i32_43 = arith.constant 7 : i32
    %126 = arith.subi %c7_i32_43, %c3_i32 : i32
    %cst_44 = arith.constant dense<0.000000e+00> : vector<16x256xf32>
    %127 = tpu.matmul %115, %9, %cst_44 {dimension_numbers = #tpu.dot_dimension_numbers<[1], [0], [0], [1], [0, 0, 1, 1], [], []>} : vector<16x32xf32>, vector<32x256xf32>, vector<16x256xf32> -> vector<16x256xf32>
    %128 = arith.index_cast %c3_i32 : i32 to index
    %c0_45 = arith.constant 0 : index
    %c0_46 = arith.constant 0 : index
    %129 = vector.load %arg7[%128, %c0_45, %c0_46] : memref<8x8x256xf32, #tpu.memory_space<vmem>>, vector<1x8x128xf32>
    %130 = vector.shape_cast %129 : vector<1x8x128xf32> to vector<8x128xf32>
    %131 = vector.extract_strided_slice %127 {offsets = [0, 0], sizes = [8, 128], strides = [1, 1]} : vector<16x256xf32> to vector<8x128xf32>
    %132 = arith.addf %130, %131 : vector<8x128xf32>
    %133 = arith.index_cast %126 : i32 to index
    %c0_47 = arith.constant 0 : index
    %c128_48 = arith.constant 128 : index
    %134 = vector.load %arg7[%133, %c0_47, %c128_48] : memref<8x8x256xf32, #tpu.memory_space<vmem>>, vector<1x8x128xf32>
    %135 = vector.shape_cast %134 : vector<1x8x128xf32> to vector<8x128xf32>
    %136 = vector.extract_strided_slice %127 {offsets = [8, 128], sizes = [8, 128], strides = [1, 1]} : vector<16x256xf32> to vector<8x128xf32>
    %137 = arith.addf %135, %136 : vector<8x128xf32>
    %138 = tpu.concatenate %132, %137 in 0 : vector<8x128xf32>, vector<8x128xf32> -> vector<16x128xf32>
    %139 = arith.negf %138 : vector<16x128xf32>
    %140 = math.exp %139 : vector<16x128xf32>
    %cst_49 = arith.constant 1.000000e+00 : f32
    %141 = vector.broadcast %cst_49 : f32 to vector<16x128xf32>
    %142 = arith.addf %141, %140 : vector<16x128xf32>
    %143 = arith.divf %141, %142 : vector<16x128xf32>
    %144 = math.tanh %138 : vector<16x128xf32>
    %145 = vector.extract_strided_slice %143 {offsets = [0, 0], sizes = [16, 32], strides = [1, 1]} : vector<16x128xf32> to vector<16x32xf32>
    %146 = vector.extract_strided_slice %143 {offsets = [0, 32], sizes = [16, 32], strides = [1, 1]} : vector<16x128xf32> to vector<16x32xf32>
    %147 = vector.extract_strided_slice %144 {offsets = [0, 64], sizes = [16, 32], strides = [1, 1]} : vector<16x128xf32> to vector<16x32xf32>
    %148 = vector.extract_strided_slice %143 {offsets = [0, 96], sizes = [16, 32], strides = [1, 1]} : vector<16x128xf32> to vector<16x32xf32>
    %149 = arith.mulf %146, %113 : vector<16x32xf32>
    %150 = arith.mulf %145, %147 : vector<16x32xf32>
    %151 = arith.addf %149, %150 : vector<16x32xf32>
    %152 = math.tanh %151 : vector<16x32xf32>
    %153 = arith.mulf %148, %152 : vector<16x32xf32>
    %154 = vector.extract_strided_slice %153 {offsets = [0, 0], sizes = [8, 32], strides = [1, 1]} : vector<16x32xf32> to vector<8x32xf32>
    %155 = arith.index_cast %c3_i32 : i32 to index
    %c0_50 = arith.constant 0 : index
    %c0_51 = arith.constant 0 : index
    %156 = vector.load %arg8[%155, %c0_50, %c0_51] : memref<8x8x64xf32, #tpu.memory_space<vmem>>, vector<1x8x32xf32>
    %157 = vector.shape_cast %156 : vector<1x8x32xf32> to vector<8x32xf32>
    %158 = vector.shape_cast %154 : vector<8x32xf32> to vector<1x8x32xf32>
    tpu.vector_store %arg8[%155, %c0_50, %c0_51], %158 {strides = array<i32>} : memref<8x8x64xf32, #tpu.memory_space<vmem>>, vector<1x8x32xf32>,
    %159 = vector.extract_strided_slice %153 {offsets = [8, 0], sizes = [8, 32], strides = [1, 1]} : vector<16x32xf32> to vector<8x32xf32>
    %160 = arith.index_cast %126 : i32 to index
    %c0_52 = arith.constant 0 : index
    %c32_53 = arith.constant 32 : index
    %161 = vector.load %arg8[%160, %c0_52, %c32_53] : memref<8x8x64xf32, #tpu.memory_space<vmem>>, vector<1x8x32xf32>
    %162 = vector.shape_cast %161 : vector<1x8x32xf32> to vector<8x32xf32>
    %163 = vector.shape_cast %159 : vector<8x32xf32> to vector<1x8x32xf32>
    tpu.vector_store %arg8[%160, %c0_52, %c32_53], %163 {strides = array<i32>} : memref<8x8x64xf32, #tpu.memory_space<vmem>>, vector<1x8x32xf32>,
    %c4_i32 = arith.constant 4 : i32
    %c7_i32_54 = arith.constant 7 : i32
    %164 = arith.subi %c7_i32_54, %c4_i32 : i32
    %cst_55 = arith.constant dense<0.000000e+00> : vector<16x256xf32>
    %165 = tpu.matmul %153, %9, %cst_55 {dimension_numbers = #tpu.dot_dimension_numbers<[1], [0], [0], [1], [0, 0, 1, 1], [], []>} : vector<16x32xf32>, vector<32x256xf32>, vector<16x256xf32> -> vector<16x256xf32>
    %166 = arith.index_cast %c4_i32 : i32 to index
    %c0_56 = arith.constant 0 : index
    %c0_57 = arith.constant 0 : index
    %167 = vector.load %arg7[%166, %c0_56, %c0_57] : memref<8x8x256xf32, #tpu.memory_space<vmem>>, vector<1x8x128xf32>
    %168 = vector.shape_cast %167 : vector<1x8x128xf32> to vector<8x128xf32>
    %169 = vector.extract_strided_slice %165 {offsets = [0, 0], sizes = [8, 128], strides = [1, 1]} : vector<16x256xf32> to vector<8x128xf32>
    %170 = arith.addf %168, %169 : vector<8x128xf32>
    %171 = arith.index_cast %164 : i32 to index
    %c0_58 = arith.constant 0 : index
    %c128_59 = arith.constant 128 : index
    %172 = vector.load %arg7[%171, %c0_58, %c128_59] : memref<8x8x256xf32, #tpu.memory_space<vmem>>, vector<1x8x128xf32>
    %173 = vector.shape_cast %172 : vector<1x8x128xf32> to vector<8x128xf32>
    %174 = vector.extract_strided_slice %165 {offsets = [8, 128], sizes = [8, 128], strides = [1, 1]} : vector<16x256xf32> to vector<8x128xf32>
    %175 = arith.addf %173, %174 : vector<8x128xf32>
    %176 = tpu.concatenate %170, %175 in 0 : vector<8x128xf32>, vector<8x128xf32> -> vector<16x128xf32>
    %177 = arith.negf %176 : vector<16x128xf32>
    %178 = math.exp %177 : vector<16x128xf32>
    %cst_60 = arith.constant 1.000000e+00 : f32
    %179 = vector.broadcast %cst_60 : f32 to vector<16x128xf32>
    %180 = arith.addf %179, %178 : vector<16x128xf32>
    %181 = arith.divf %179, %180 : vector<16x128xf32>
    %182 = math.tanh %176 : vector<16x128xf32>
    %183 = vector.extract_strided_slice %181 {offsets = [0, 0], sizes = [16, 32], strides = [1, 1]} : vector<16x128xf32> to vector<16x32xf32>
    %184 = vector.extract_strided_slice %181 {offsets = [0, 32], sizes = [16, 32], strides = [1, 1]} : vector<16x128xf32> to vector<16x32xf32>
    %185 = vector.extract_strided_slice %182 {offsets = [0, 64], sizes = [16, 32], strides = [1, 1]} : vector<16x128xf32> to vector<16x32xf32>
    %186 = vector.extract_strided_slice %181 {offsets = [0, 96], sizes = [16, 32], strides = [1, 1]} : vector<16x128xf32> to vector<16x32xf32>
    %187 = arith.mulf %184, %151 : vector<16x32xf32>
    %188 = arith.mulf %183, %185 : vector<16x32xf32>
    %189 = arith.addf %187, %188 : vector<16x32xf32>
    %190 = math.tanh %189 : vector<16x32xf32>
    %191 = arith.mulf %186, %190 : vector<16x32xf32>
    %192 = vector.extract_strided_slice %191 {offsets = [0, 0], sizes = [8, 32], strides = [1, 1]} : vector<16x32xf32> to vector<8x32xf32>
    %193 = arith.index_cast %c4_i32 : i32 to index
    %c0_61 = arith.constant 0 : index
    %c0_62 = arith.constant 0 : index
    %194 = vector.load %arg8[%193, %c0_61, %c0_62] : memref<8x8x64xf32, #tpu.memory_space<vmem>>, vector<1x8x32xf32>
    %195 = vector.shape_cast %194 : vector<1x8x32xf32> to vector<8x32xf32>
    %196 = vector.shape_cast %192 : vector<8x32xf32> to vector<1x8x32xf32>
    tpu.vector_store %arg8[%193, %c0_61, %c0_62], %196 {strides = array<i32>} : memref<8x8x64xf32, #tpu.memory_space<vmem>>, vector<1x8x32xf32>,
    %197 = vector.extract_strided_slice %191 {offsets = [8, 0], sizes = [8, 32], strides = [1, 1]} : vector<16x32xf32> to vector<8x32xf32>
    %198 = arith.index_cast %164 : i32 to index
    %c0_63 = arith.constant 0 : index
    %c32_64 = arith.constant 32 : index
    %199 = vector.load %arg8[%198, %c0_63, %c32_64] : memref<8x8x64xf32, #tpu.memory_space<vmem>>, vector<1x8x32xf32>
    %200 = vector.shape_cast %199 : vector<1x8x32xf32> to vector<8x32xf32>
    %201 = vector.shape_cast %197 : vector<8x32xf32> to vector<1x8x32xf32>
    tpu.vector_store %arg8[%198, %c0_63, %c32_64], %201 {strides = array<i32>} : memref<8x8x64xf32, #tpu.memory_space<vmem>>, vector<1x8x32xf32>,
    %c5_i32 = arith.constant 5 : i32
    %c7_i32_65 = arith.constant 7 : i32
    %202 = arith.subi %c7_i32_65, %c5_i32 : i32
    %cst_66 = arith.constant dense<0.000000e+00> : vector<16x256xf32>
    %203 = tpu.matmul %191, %9, %cst_66 {dimension_numbers = #tpu.dot_dimension_numbers<[1], [0], [0], [1], [0, 0, 1, 1], [], []>} : vector<16x32xf32>, vector<32x256xf32>, vector<16x256xf32> -> vector<16x256xf32>
    %204 = arith.index_cast %c5_i32 : i32 to index
    %c0_67 = arith.constant 0 : index
    %c0_68 = arith.constant 0 : index
    %205 = vector.load %arg7[%204, %c0_67, %c0_68] : memref<8x8x256xf32, #tpu.memory_space<vmem>>, vector<1x8x128xf32>
    %206 = vector.shape_cast %205 : vector<1x8x128xf32> to vector<8x128xf32>
    %207 = vector.extract_strided_slice %203 {offsets = [0, 0], sizes = [8, 128], strides = [1, 1]} : vector<16x256xf32> to vector<8x128xf32>
    %208 = arith.addf %206, %207 : vector<8x128xf32>
    %209 = arith.index_cast %202 : i32 to index
    %c0_69 = arith.constant 0 : index
    %c128_70 = arith.constant 128 : index
    %210 = vector.load %arg7[%209, %c0_69, %c128_70] : memref<8x8x256xf32, #tpu.memory_space<vmem>>, vector<1x8x128xf32>
    %211 = vector.shape_cast %210 : vector<1x8x128xf32> to vector<8x128xf32>
    %212 = vector.extract_strided_slice %203 {offsets = [8, 128], sizes = [8, 128], strides = [1, 1]} : vector<16x256xf32> to vector<8x128xf32>
    %213 = arith.addf %211, %212 : vector<8x128xf32>
    %214 = tpu.concatenate %208, %213 in 0 : vector<8x128xf32>, vector<8x128xf32> -> vector<16x128xf32>
    %215 = arith.negf %214 : vector<16x128xf32>
    %216 = math.exp %215 : vector<16x128xf32>
    %cst_71 = arith.constant 1.000000e+00 : f32
    %217 = vector.broadcast %cst_71 : f32 to vector<16x128xf32>
    %218 = arith.addf %217, %216 : vector<16x128xf32>
    %219 = arith.divf %217, %218 : vector<16x128xf32>
    %220 = math.tanh %214 : vector<16x128xf32>
    %221 = vector.extract_strided_slice %219 {offsets = [0, 0], sizes = [16, 32], strides = [1, 1]} : vector<16x128xf32> to vector<16x32xf32>
    %222 = vector.extract_strided_slice %219 {offsets = [0, 32], sizes = [16, 32], strides = [1, 1]} : vector<16x128xf32> to vector<16x32xf32>
    %223 = vector.extract_strided_slice %220 {offsets = [0, 64], sizes = [16, 32], strides = [1, 1]} : vector<16x128xf32> to vector<16x32xf32>
    %224 = vector.extract_strided_slice %219 {offsets = [0, 96], sizes = [16, 32], strides = [1, 1]} : vector<16x128xf32> to vector<16x32xf32>
    %225 = arith.mulf %222, %189 : vector<16x32xf32>
    %226 = arith.mulf %221, %223 : vector<16x32xf32>
    %227 = arith.addf %225, %226 : vector<16x32xf32>
    %228 = math.tanh %227 : vector<16x32xf32>
    %229 = arith.mulf %224, %228 : vector<16x32xf32>
    %230 = vector.extract_strided_slice %229 {offsets = [0, 0], sizes = [8, 32], strides = [1, 1]} : vector<16x32xf32> to vector<8x32xf32>
    %231 = arith.index_cast %c5_i32 : i32 to index
    %c0_72 = arith.constant 0 : index
    %c0_73 = arith.constant 0 : index
    %232 = vector.load %arg8[%231, %c0_72, %c0_73] : memref<8x8x64xf32, #tpu.memory_space<vmem>>, vector<1x8x32xf32>
    %233 = vector.shape_cast %232 : vector<1x8x32xf32> to vector<8x32xf32>
    %234 = vector.shape_cast %230 : vector<8x32xf32> to vector<1x8x32xf32>
    tpu.vector_store %arg8[%231, %c0_72, %c0_73], %234 {strides = array<i32>} : memref<8x8x64xf32, #tpu.memory_space<vmem>>, vector<1x8x32xf32>,
    %235 = vector.extract_strided_slice %229 {offsets = [8, 0], sizes = [8, 32], strides = [1, 1]} : vector<16x32xf32> to vector<8x32xf32>
    %236 = arith.index_cast %202 : i32 to index
    %c0_74 = arith.constant 0 : index
    %c32_75 = arith.constant 32 : index
    %237 = vector.load %arg8[%236, %c0_74, %c32_75] : memref<8x8x64xf32, #tpu.memory_space<vmem>>, vector<1x8x32xf32>
    %238 = vector.shape_cast %237 : vector<1x8x32xf32> to vector<8x32xf32>
    %239 = vector.shape_cast %235 : vector<8x32xf32> to vector<1x8x32xf32>
    tpu.vector_store %arg8[%236, %c0_74, %c32_75], %239 {strides = array<i32>} : memref<8x8x64xf32, #tpu.memory_space<vmem>>, vector<1x8x32xf32>,
    %c6_i32 = arith.constant 6 : i32
    %c7_i32_76 = arith.constant 7 : i32
    %240 = arith.subi %c7_i32_76, %c6_i32 : i32
    %cst_77 = arith.constant dense<0.000000e+00> : vector<16x256xf32>
    %241 = tpu.matmul %229, %9, %cst_77 {dimension_numbers = #tpu.dot_dimension_numbers<[1], [0], [0], [1], [0, 0, 1, 1], [], []>} : vector<16x32xf32>, vector<32x256xf32>, vector<16x256xf32> -> vector<16x256xf32>
    %242 = arith.index_cast %c6_i32 : i32 to index
    %c0_78 = arith.constant 0 : index
    %c0_79 = arith.constant 0 : index
    %243 = vector.load %arg7[%242, %c0_78, %c0_79] : memref<8x8x256xf32, #tpu.memory_space<vmem>>, vector<1x8x128xf32>
    %244 = vector.shape_cast %243 : vector<1x8x128xf32> to vector<8x128xf32>
    %245 = vector.extract_strided_slice %241 {offsets = [0, 0], sizes = [8, 128], strides = [1, 1]} : vector<16x256xf32> to vector<8x128xf32>
    %246 = arith.addf %244, %245 : vector<8x128xf32>
    %247 = arith.index_cast %240 : i32 to index
    %c0_80 = arith.constant 0 : index
    %c128_81 = arith.constant 128 : index
    %248 = vector.load %arg7[%247, %c0_80, %c128_81] : memref<8x8x256xf32, #tpu.memory_space<vmem>>, vector<1x8x128xf32>
    %249 = vector.shape_cast %248 : vector<1x8x128xf32> to vector<8x128xf32>
    %250 = vector.extract_strided_slice %241 {offsets = [8, 128], sizes = [8, 128], strides = [1, 1]} : vector<16x256xf32> to vector<8x128xf32>
    %251 = arith.addf %249, %250 : vector<8x128xf32>
    %252 = tpu.concatenate %246, %251 in 0 : vector<8x128xf32>, vector<8x128xf32> -> vector<16x128xf32>
    %253 = arith.negf %252 : vector<16x128xf32>
    %254 = math.exp %253 : vector<16x128xf32>
    %cst_82 = arith.constant 1.000000e+00 : f32
    %255 = vector.broadcast %cst_82 : f32 to vector<16x128xf32>
    %256 = arith.addf %255, %254 : vector<16x128xf32>
    %257 = arith.divf %255, %256 : vector<16x128xf32>
    %258 = math.tanh %252 : vector<16x128xf32>
    %259 = vector.extract_strided_slice %257 {offsets = [0, 0], sizes = [16, 32], strides = [1, 1]} : vector<16x128xf32> to vector<16x32xf32>
    %260 = vector.extract_strided_slice %257 {offsets = [0, 32], sizes = [16, 32], strides = [1, 1]} : vector<16x128xf32> to vector<16x32xf32>
    %261 = vector.extract_strided_slice %258 {offsets = [0, 64], sizes = [16, 32], strides = [1, 1]} : vector<16x128xf32> to vector<16x32xf32>
    %262 = vector.extract_strided_slice %257 {offsets = [0, 96], sizes = [16, 32], strides = [1, 1]} : vector<16x128xf32> to vector<16x32xf32>
    %263 = arith.mulf %260, %227 : vector<16x32xf32>
    %264 = arith.mulf %259, %261 : vector<16x32xf32>
    %265 = arith.addf %263, %264 : vector<16x32xf32>
    %266 = math.tanh %265 : vector<16x32xf32>
    %267 = arith.mulf %262, %266 : vector<16x32xf32>
    %268 = vector.extract_strided_slice %267 {offsets = [0, 0], sizes = [8, 32], strides = [1, 1]} : vector<16x32xf32> to vector<8x32xf32>
    %269 = arith.index_cast %c6_i32 : i32 to index
    %c0_83 = arith.constant 0 : index
    %c0_84 = arith.constant 0 : index
    %270 = vector.load %arg8[%269, %c0_83, %c0_84] : memref<8x8x64xf32, #tpu.memory_space<vmem>>, vector<1x8x32xf32>
    %271 = vector.shape_cast %270 : vector<1x8x32xf32> to vector<8x32xf32>
    %272 = vector.shape_cast %268 : vector<8x32xf32> to vector<1x8x32xf32>
    tpu.vector_store %arg8[%269, %c0_83, %c0_84], %272 {strides = array<i32>} : memref<8x8x64xf32, #tpu.memory_space<vmem>>, vector<1x8x32xf32>,
    %273 = vector.extract_strided_slice %267 {offsets = [8, 0], sizes = [8, 32], strides = [1, 1]} : vector<16x32xf32> to vector<8x32xf32>
    %274 = arith.index_cast %240 : i32 to index
    %c0_85 = arith.constant 0 : index
    %c32_86 = arith.constant 32 : index
    %275 = vector.load %arg8[%274, %c0_85, %c32_86] : memref<8x8x64xf32, #tpu.memory_space<vmem>>, vector<1x8x32xf32>
    %276 = vector.shape_cast %275 : vector<1x8x32xf32> to vector<8x32xf32>
    %277 = vector.shape_cast %273 : vector<8x32xf32> to vector<1x8x32xf32>
    tpu.vector_store %arg8[%274, %c0_85, %c32_86], %277 {strides = array<i32>} : memref<8x8x64xf32, #tpu.memory_space<vmem>>, vector<1x8x32xf32>,
    %c7_i32_87 = arith.constant 7 : i32
    %c7_i32_88 = arith.constant 7 : i32
    %278 = arith.subi %c7_i32_88, %c7_i32_87 : i32
    %cst_89 = arith.constant dense<0.000000e+00> : vector<16x256xf32>
    %279 = tpu.matmul %267, %9, %cst_89 {dimension_numbers = #tpu.dot_dimension_numbers<[1], [0], [0], [1], [0, 0, 1, 1], [], []>} : vector<16x32xf32>, vector<32x256xf32>, vector<16x256xf32> -> vector<16x256xf32>
    %280 = arith.index_cast %c7_i32_87 : i32 to index
    %c0_90 = arith.constant 0 : index
    %c0_91 = arith.constant 0 : index
    %281 = vector.load %arg7[%280, %c0_90, %c0_91] : memref<8x8x256xf32, #tpu.memory_space<vmem>>, vector<1x8x128xf32>
    %282 = vector.shape_cast %281 : vector<1x8x128xf32> to vector<8x128xf32>
    %283 = vector.extract_strided_slice %279 {offsets = [0, 0], sizes = [8, 128], strides = [1, 1]} : vector<16x256xf32> to vector<8x128xf32>
    %284 = arith.addf %282, %283 : vector<8x128xf32>
    %285 = arith.index_cast %278 : i32 to index
    %c0_92 = arith.constant 0 : index
    %c128_93 = arith.constant 128 : index
    %286 = vector.load %arg7[%285, %c0_92, %c128_93] : memref<8x8x256xf32, #tpu.memory_space<vmem>>, vector<1x8x128xf32>
    %287 = vector.shape_cast %286 : vector<1x8x128xf32> to vector<8x128xf32>
    %288 = vector.extract_strided_slice %279 {offsets = [8, 128], sizes = [8, 128], strides = [1, 1]} : vector<16x256xf32> to vector<8x128xf32>
    %289 = arith.addf %287, %288 : vector<8x128xf32>
    %290 = tpu.concatenate %284, %289 in 0 : vector<8x128xf32>, vector<8x128xf32> -> vector<16x128xf32>
    %291 = arith.negf %290 : vector<16x128xf32>
    %292 = math.exp %291 : vector<16x128xf32>
    %cst_94 = arith.constant 1.000000e+00 : f32
    %293 = vector.broadcast %cst_94 : f32 to vector<16x128xf32>
    %294 = arith.addf %293, %292 : vector<16x128xf32>
    %295 = arith.divf %293, %294 : vector<16x128xf32>
    %296 = math.tanh %290 : vector<16x128xf32>
    %297 = vector.extract_strided_slice %295 {offsets = [0, 0], sizes = [16, 32], strides = [1, 1]} : vector<16x128xf32> to vector<16x32xf32>
    %298 = vector.extract_strided_slice %295 {offsets = [0, 32], sizes = [16, 32], strides = [1, 1]} : vector<16x128xf32> to vector<16x32xf32>
    %299 = vector.extract_strided_slice %296 {offsets = [0, 64], sizes = [16, 32], strides = [1, 1]} : vector<16x128xf32> to vector<16x32xf32>
    %300 = vector.extract_strided_slice %295 {offsets = [0, 96], sizes = [16, 32], strides = [1, 1]} : vector<16x128xf32> to vector<16x32xf32>
    %301 = arith.mulf %298, %265 : vector<16x32xf32>
    %302 = arith.mulf %297, %299 : vector<16x32xf32>
    %303 = arith.addf %301, %302 : vector<16x32xf32>
    %304 = math.tanh %303 : vector<16x32xf32>
    %305 = arith.mulf %300, %304 : vector<16x32xf32>
    %306 = vector.extract_strided_slice %305 {offsets = [0, 0], sizes = [8, 32], strides = [1, 1]} : vector<16x32xf32> to vector<8x32xf32>
    %307 = arith.index_cast %c7_i32_87 : i32 to index
    %c0_95 = arith.constant 0 : index
    %c0_96 = arith.constant 0 : index
    %308 = vector.load %arg8[%307, %c0_95, %c0_96] : memref<8x8x64xf32, #tpu.memory_space<vmem>>, vector<1x8x32xf32>
    %309 = vector.shape_cast %308 : vector<1x8x32xf32> to vector<8x32xf32>
    %310 = vector.shape_cast %306 : vector<8x32xf32> to vector<1x8x32xf32>
    tpu.vector_store %arg8[%307, %c0_95, %c0_96], %310 {strides = array<i32>} : memref<8x8x64xf32, #tpu.memory_space<vmem>>, vector<1x8x32xf32>,
    %311 = vector.extract_strided_slice %305 {offsets = [8, 0], sizes = [8, 32], strides = [1, 1]} : vector<16x32xf32> to vector<8x32xf32>
    %312 = arith.index_cast %278 : i32 to index
    %c0_97 = arith.constant 0 : index
    %c32_98 = arith.constant 32 : index
    %313 = vector.load %arg8[%312, %c0_97, %c32_98] : memref<8x8x64xf32, #tpu.memory_space<vmem>>, vector<1x8x32xf32>
    %314 = vector.shape_cast %313 : vector<1x8x32xf32> to vector<8x32xf32>
    %315 = vector.shape_cast %311 : vector<8x32xf32> to vector<1x8x32xf32>
    tpu.vector_store %arg8[%312, %c0_97, %c32_98], %315 {strides = array<i32>} : memref<8x8x64xf32, #tpu.memory_space<vmem>>, vector<1x8x32xf32>,
    %c8_i32 = arith.constant 8 : i32
    %c0_99 = arith.constant 0 : index
    %c0_100 = arith.constant 0 : index
    %c0_101 = arith.constant 0 : index
    %316 = vector.load %arg8[%c0_99, %c0_100, %c0_101] : memref<8x8x64xf32, #tpu.memory_space<vmem>>, vector<8x8x64xf32>
    %317 = vector.shape_cast %316 : vector<8x8x64xf32> to vector<64x64xf32>
    %c0_102 = arith.constant 0 : index
    %c0_103 = arith.constant 0 : index
    %318 = vector.load %arg4[%c0_102, %c0_103] : memref<64x128xf32, #tpu.memory_space<vmem>>, vector<64x128xf32>
    %cst_104 = arith.constant dense<0.000000e+00> : vector<64x128xf32>
    %319 = tpu.matmul %317, %318, %cst_104 {dimension_numbers = #tpu.dot_dimension_numbers<[1], [0], [0], [1], [0, 0, 1, 1], [], []>} : vector<64x64xf32>, vector<64x128xf32>, vector<64x128xf32> -> vector<64x128xf32>
    %c0_105 = arith.constant 0 : index
    %c0_106 = arith.constant 0 : index
    %320 = vector.load %arg5[%c0_105, %c0_106] : memref<1x128xf32, #tpu.memory_space<vmem>>, vector<1x128xf32>
    %321 = vector.broadcast %320 : vector<1x128xf32> to vector<64x128xf32>
    %322 = arith.addf %319, %321 : vector<64x128xf32>
    %323 = vector.shape_cast %322 : vector<64x128xf32> to vector<8x8x128xf32>
    %c0_107 = arith.constant 0 : index
    %c0_108 = arith.constant 0 : index
    %c0_109 = arith.constant 0 : index
    %324 = vector.load %arg6[%c0_107, %c0_108, %c0_109] : memref<8x8x128xf32, #tpu.memory_space<vmem>>, vector<8x8x128xf32>
    tpu.vector_store %arg6[%c0_107, %c0_108, %c0_109], %323 {strides = array<i32>} : memref<8x8x128xf32, #tpu.memory_space<vmem>>, vector<8x8x128xf32>,
    return
  }
}

</mosaic_0001>

<bundles_post_ra>
// kernel: tpu_custom_call.1
= control target key start
LH: loop header
LB: loop body
LE: loop exit
PB: predicated region body
PF: predicated region fallthrough
CT: control target
= control target key end

     0   :  { %11 = vsyncpa [#allocation5], 0  ;;  %s2462_s0 = inlined_call_operand.hbm [shape: f32[8,8,16], index: 0, kind: input, shape index: {}]   ;;  %s2463_s1 = inlined_call_operand.hbm [shape: f32[16,256], index: 1, kind: input, shape index: {}]   ;;  %s2464_s2 = inlined_call_operand.hbm [shape: f32[32,256], index: 2, kind: input, shape index: {}]   ;;  %s2465_s3 = inlined_call_operand.vmem [shape: f32[1,256], index: 3, kind: input, shape index: {}]   ;;  %s2466_s4 = inlined_call_operand.hbm [shape: f32[64,128], index: 4, kind: input, shape index: {}]   ;;  %s2467_s5 = inlined_call_operand.vmem [shape: f32[1,128], index: 5, kind: input, shape index: {}]   ;;  %s2468_s6 = inlined_call_operand.hbm [shape: f32[8,8,128], index: 6, kind: output, shape index: {}]  }
   0x1   :  { %12 = vsyncpa [#allocation8], 0 }
   0x2   :  { %13 = vsyncpa [#allocation11], 0 }
   0x3   :  { %14 = vsyncpa [#allocation6], 0  ;;  %s2037_s21 = smov [#allocation7]   ;;  %s1919_s25 = scalar_lea.hbm %s2463_s1, 512 }
   0x4   :  { %s32_s22 = sshll.u32 %s2037_s21, 4  ;;  %p1920_p0 = scmp.ne.s32.totalorder %s2463_s1, %s1919_s25  ;;  %s33_s22 = int_to_ptr.vmem [resolvable:$true] %s32_s22 }
   0x5   :  { %p1923_p1 = scmp.lt.u32.totalorder %s1919_s25, %s2463_s1 }
   0x7   :  { %p1925_p2 = pnand %p1923_p1, %p1920_p0 }
   0x9   :  { %1928 = shalt.err (!%p1925_p2)
}
   0xa   :  { %s1929_s30 = scalar_lea.vmem %s33_s22, 512  ;;  %p1934_p4 = scmp.lt.s32.totalorder %s33_s22, %s33_s22 }
   0xb   :  { %p1930_p3 = scmp.ne.s32.totalorder %s33_s22, %s1929_s30  ;;  %p1935_p5 = scmp.lt.s32.totalorder %s1929_s30, %s1929_s30 }
   0xd   :  { %p1936_p6 = por %p1935_p5, %p1934_p4 }
   0xf   :  { %p1937_p7 = pnand %p1936_p6, %p1930_p3 }
  0x11   :  { %1940 = shalt.err (!%p1937_p7)
}
  0x12   :  { %s2038_s7 = smov 256   ;;  %s2039_s8 = smov 16  }
  0x13   :  { %38 = dma.hbm_to_vmem [thread:$0]  %s2463_s1, 512, %s33_s22, [#allocation8], %s2038_s7, %s2038_s7, %s2039_s8  }
  0x14   :  { %s2040_s11 = smov [#allocation4]   ;;  %s1941_s15 = scalar_lea.hbm %s2462_s0, 1024 }
  0x15   :  { %s20_s12 = sshll.u32 %s2040_s11, 4  ;;  %p1942_p8 = scmp.ne.s32.totalorder %s2462_s0, %s1941_s15  ;;  %s21_s12 = int_to_ptr.vmem [resolvable:$true] %s20_s12 }
  0x16   :  { %p1945_p9 = scmp.lt.u32.totalorder %s1941_s15, %s2462_s0 }
  0x18   :  { %p1947_p10 = pnand %p1945_p9, %p1942_p8 }
  0x1a   :  { %1950 = shalt.err (!%p1947_p10)
}
  0x1b   :  { %s1951_s20 = scalar_lea.vmem %s21_s12, 1024  ;;  %p1956_p12 = scmp.lt.s32.totalorder %s21_s12, %s21_s12 }
  0x1c   :  { %p1952_p11 = scmp.ne.s32.totalorder %s21_s12, %s1951_s20  ;;  %p1957_p13 = scmp.lt.s32.totalorder %s1951_s20, %s1951_s20 }
  0x1e   :  { %p1958_p0 = por %p1957_p13, %p1956_p12 }
  0x20   :  { %p1959_p1 = pnand %p1958_p0, %p1952_p11 }
  0x22   :  { %1962 = shalt.err (!%p1959_p1)
}
  0x23   :  { %s2041_s1 = smov 128   ;;  %s2042_s21 = smov 8  }
  0x24   :  { %26 = dma.hbm_to_vmem [thread:$0]  %s2462_s0, 1024, %s21_s12, [#allocation5], %s2041_s1, %s2041_s1, %s2042_s21  }
  0x25   :  { %s2043_s24 = smov [#allocation9]   ;;  %s2044_s26 = smov [#allocation10]  }
  0x26   :  { %s44_s25 = sshll.u32 %s2043_s24, 4  ;;  %s58_s27 = sshll.u32 %s2044_s26, 4  ;;  %s45_s25 = int_to_ptr.vmem [resolvable:$true] %s44_s25  ;;  %s2114_s27 = int_to_ptr.vmem [resolvable:$true] %s58_s27 }
  0x27   :  { %s1963_s30 = scalar_lea.hbm %s2464_s2, 1024 }
  0x28   :  { %p1964_p2 = scmp.ne.s32.totalorder %s2464_s2, %s1963_s30  ;;  %p1967_p3 = scmp.lt.u32.totalorder %s1963_s30, %s2464_s2 }
  0x2a   :  { %p1969_p4 = pnand %p1967_p3, %p1964_p2 }
  0x2c   :  { %1972 = shalt.err (!%p1969_p4)
}
  0x2d   :  { %s1973_s0 = scalar_lea.vmem %s45_s25, 1024  ;;  %p1978_p6 = scmp.lt.s32.totalorder %s45_s25, %s45_s25 }
  0x2e   :  { %p1974_p5 = scmp.ne.s32.totalorder %s45_s25, %s1973_s0  ;;  %p1979_p7 = scmp.lt.s32.totalorder %s1973_s0, %s1973_s0 }
  0x30   :  { %p1980_p8 = por %p1979_p7, %p1978_p6 }
  0x32   :  { %p1981_p9 = pnand %p1980_p8, %p1974_p5 }
  0x34   :  { %1984 = shalt.err (!%p1981_p9)
}
  0x35   :  { %50 = dma.hbm_to_vmem [thread:$0]  %s2464_s2, 1024, %s45_s25, [#allocation8], %s2038_s7, %s2038_s7, %s2039_s8  }
  0x36   :  { %s1985_s17 = scalar_lea.hbm %s2466_s4, 1024 }
  0x37   :  { %p1986_p10 = scmp.ne.s32.totalorder %s2466_s4, %s1985_s17  ;;  %p1989_p11 = scmp.lt.u32.totalorder %s1985_s17, %s2466_s4 }
  0x39   :  { %p1991_p12 = pnand %p1989_p11, %p1986_p10 }
  0x3b   :  { %1994 = shalt.err (!%p1991_p12)
}
  0x3c   :  { %s1995_s23 = scalar_lea.vmem %s2114_s27, 1024  ;;  %p2000_p0 = scmp.lt.s32.totalorder %s2114_s27, %s2114_s27 }
  0x3d   :  { %p1996_p13 = scmp.ne.s32.totalorder %s2114_s27, %s1995_s23  ;;  %p2001_p1 = scmp.lt.s32.totalorder %s1995_s23, %s1995_s23 }
  0x3f   :  { %p2002_p2 = por %p2001_p1, %p2000_p0 }
  0x41   :  { %p2003_p3 = pnand %p2002_p2, %p1996_p13 }
  0x43   :  { %2006 = shalt.err (!%p2003_p3)
}
  0x44   :  { %64 = dma.hbm_to_vmem [thread:$0]  %s2466_s4, 1024, %s2114_s27, [#allocation11], %s2041_s1, %s2041_s1, %s2042_s21  }
  0x45   :  { %2029 = dma.done.wait [#allocation5], 1024  }
  0x46   :  { %2030 = vsyncadd [#allocation5], 4294966272 }
  0x47   :  { %2031 = dma.done.wait [#allocation8], 1536  }
  0x48   :  { %2032 = vsyncadd [#allocation8], 4294965760 }
  0x49   :  { %2033 = dma.done.wait [#allocation11], 1024  }
  0x4a   :  { %2034 = vsyncadd [#allocation11], 4294966272  ;;  %v2045_v0 = vmov 0.0   ;;  %v88_v1 = vld [vmem:[#allocation7 + $0x8] sm:$0xff]  ;;  %v90_v2 = vld [vmem:[#allocation7 + $0x18] sm:$0xff]  ;;  %vm103_vm0 = vcmask 130048   ;;  %v93_v23 = vlaneseq }
  0x4b   :  { %222 = vmatprep.mubr.f32.mxu1 %v2045_v0  ;;  %192 = vmatprep.mubr.f32.mxu0 %v2045_v0  ;;  %v87_v3 = vld [vmem:[#allocation7] sm:$0xff]  ;;  %v1693_v4 = vpack.c.bf16 %v90_v2, %v88_v1  ;;  %v89_v5 = vld [vmem:[#allocation7 + $0x10] sm:$0xff]  ;;  %v258_v6 = vld [vmem:[#allocation9 + $0x8] sm:$0xff]  ;;  %s2047_s24 = smov 32   ;;  %vm265_vm1 = vcmask 261120   ;;  %vm407_vm2 = vcmask 523520  }
  0x4c   :  { %v1695_v7 = vpack.c.bf16 %v89_v5, %v87_v3  ;;  %v260_v8 = vld [vmem:[#allocation9 + $0x18] sm:$0xff]  ;;  %v257_v9 = vld [vmem:[#allocation9] sm:$0xff]  ;;  %v259_v10 = vld [vmem:[#allocation9 + $0x10] sm:$0xff]  ;;  %v94_v24 = vshrl.u32 %v93_v23, 7  ;;  %vm1445_vm3 = vcmask 523264   ;;  %s2048_s27 = smov [#allocation12]  }
  0x4d   :  { %1777 = vmatprep.subr.bf16.mxu1 %v1693_v4  ;;  %v2153_v11 = vpack.c.bf16 %v260_v8, %v258_v6  ;;  %1694 = vmatprep.subr.bf16.mxu0 %v1693_v4  ;;  %v262_v12 = vld [vmem:[#allocation9 + $0x28] sm:$0xff]  ;;  %v264_v13 = vld [vmem:[#allocation9 + $0x38] sm:$0xff]  ;;  %v2155_v15 = vpack.c.bf16 %v259_v10, %v257_v9  ;;  %v261_v17 = vld [vmem:[#allocation9 + $0x20] sm:$0xff] }
  0x4e   :  { %1778 = vmatpush1.bf16.msra.mxu1 %v1695_v7  ;;  %v84_v14 = vld [vmem:[#allocation4 + $0x28] sm:$0xff]  ;;  %1696 = vmatpush1.bf16.msra.mxu0 %v1695_v7  ;;  %v2158_v16 = vpack.c.bf16 %v264_v13, %v262_v12  ;;  %v263_v18 = vld [vmem:[#allocation9 + $0x30] sm:$0xff]  ;;  %v79_v19 = vld [vmem:[#allocation4] sm:$0xff]  ;;  %v95_v29 = vsub.s32 0, %v94_v24  ;;  %v99_v37 = vsub.s32 1, %v94_v24 }
  0x4f   :  { %1698 = vmatprep.subr.bf16.mxu1 %v2153_v11  ;;  %1730 = vmatprep.subr.bf16.mxu0 %v2153_v11  ;;  %v85_v20 = vld [vmem:[#allocation4 + $0x30] sm:$0xff]  ;;  %v2165_v21 = vpack.c.bf16 %v263_v18, %v261_v17  ;;  %v86_v22 = vld [vmem:[#allocation4 + $0x38] sm:$0xff]  ;;  %v91_v30 = vld [vmem:[%s2465_s3] sm:$0x3]  ;;  %s2046_s3 = smov 64  }
  0x50   :  { %v2200_v33 = vrot.slane %v91_v30, %v95_v29  ;;  %v2205_v41 = vrot.slane %v91_v30, %v99_v37  ;;  %v80_v3 = vld [vmem:[#allocation4 + $0x8] sm:$0xff] }
  0x51   :  { %1607 = vmatmul.mubr.msk.f32.vlgmr.msra.gmra.mrb[0].mxu1 %vm103_vm0, %v84_v14  ;;  %1602 = vmatmul.mubr.msk.f32.vlgmr.msra.gmra.mrb[0].mxu0 %vm103_vm0, %v79_v19 }
  0x52   :  { %1700 = vmatpush1.bf16.msra.mxu1 %v2155_v15  ;;  %228 = vmatprep.mubr.f32.mxu1 %v2045_v0 }
  0x53   :  { %1702 = vmatprep.subr.bf16.mxu1 %v2158_v16  ;;  %198 = vmatprep.mubr.f32.mxu0 %v2045_v0 }
  0x54   :  { %1732 = vmatpush1.bf16.msra.mxu0 %v2155_v15 }
  0x55   :  { %1608 = vmatmul.mubr.msk.f32.gmra.mrb[2].mxu1 %vm103_vm0, %v85_v20  ;;  %1734 = vmatprep.subr.bf16.mxu0 %v2158_v16 }
  0x56   :  { %234 = vmatprep.mubr.f32.mxu1 %v2045_v0  ;;  %1704 = vmatpush1.bf16.msra.mxu1 %v2165_v21 }
  0x57   :  { %1706 = vmatprep.subr.bf16.mxu1 %v2153_v11  ;;  %1603 = vmatmul.mubr.msk.f32.gmra.mrb[2].mxu0 %vm103_vm0, %v80_v3 }
  0x58   :  { %1736 = vmatpush1.bf16.msra.mxu0 %v2165_v21  ;;  %204 = vmatprep.mubr.f32.mxu0 %v2045_v0 }
  0x59   :  { %1609 = vmatmul.mubr.msk.f32.gmra.mrb[4].mxu1 %vm103_vm0, %v86_v22  ;;  %1746 = vmatprep.subr.bf16.mxu0 %v2153_v11 }
  0x5a   :  { %333 = vmatprep.mubr.f32.mxu1 %v2045_v0 }
  0x5d   :  { %334 = vmatmul.mubr.f32.vlgmr.msra.gmra.mrb[6].mxu1 %v2045_v0 }
  0x5e   :  { %338 = vmatprep.mubr.f32.mxu1 %v2045_v0  ;;  %1708 = vmatpush1.bf16.msra.mxu1 %v2155_v15 }
  0x5f   :  { %1710 = vmatprep.subr.bf16.mxu1 %v2158_v16 }
  0x61   :  { %339 = vmatmul.mubr.f32.gmra.mrb[8].mxu1 %v2045_v0 }
  0x62   :  { %1712 = vmatpush1.bf16.msra.mxu1 %v2165_v21  ;;  %479 = vmatprep.mubr.f32.mxu1 %v2045_v0 }
  0x63   :  { %1714 = vmatprep.subr.bf16.mxu1 %v2153_v11 }
 0x124   :  { %v2187_v25 = vpop.f32.mrb[0].mxu1  ;;  %v194_v26 = vpop.f32.mrb[0].mxu0 }
 0x125   :  { %v2189_v27 = vpop.f32.mrb[1].mxu1  ;;  %v2191_v28 = vpop.f32.mrb[1].mxu0  ;;  %v195_v36 = vadd.f32 %v194_v26, %v2200_v33 }
 0x128   :  { %v2196_v31 = vpop.f32.mrb[2].mxu1 }
 0x129   :  { %v2198_v32 = vpop.f32.mrb[3].mxu1 }
 0x12a   :  { %v200_v10 = vpop.f32.mrb[2].mxu0  ;;  %v233_v22 = vadd.f32 %v2198_v32, %v2205_v41 }
 0x12b   :  { %v2236_v14 = vpop.f32.mrb[3].mxu0  ;;  %v201_v17 = vadd.f32 %v200_v10, %v2200_v33 }
 0x12c   :  { %v2202_v34 = vpop.f32.mrb[4].mxu1 }
 0x12d   :  { %v238_v35 = vpop.f32.mrb[5].mxu1 }
 0x12e   :  { %v239_v42 = vadd.f32 %v238_v35, %v2205_v41 }
 0x130   :  { %v335_v38 = vpop.f32.mrb[6].mxu1 }
 0x131   :  { %v345_v39 = vadd.f32 %v335_v38, %v195_v36  ;;  %v337_v40 = vpop.f32.mrb[7].mxu1 }
 0x133   :  { %1791 = vtanh.f32 %v345_v39  ;;  %v1610_v48 = vmul.f32 -1.442695, %v345_v39 }
 0x134   :  { %v340_v43 = vpop.f32.mrb[8].mxu1 }
 0x135   :  { %v341_v44 = vpop.f32.mrb[9].mxu1 }
 0x136   :  { %v348_v45 = vadd.f32 %v341_v44, %v239_v42 }
 0x138   :  { %1793 = vtanh.f32 %v348_v45  ;;  %v1611_v49 = vmul.f32 -1.442695, %v348_v45 }
 0x139   :  { %1795 = vpow2.f32 %v1610_v48 }
 0x13a   :  { %1797 = vpow2.f32 %v1611_v49 }
 0x13d   :  { %v1792_v46 = vpop.eup %1791 }
 0x13e   :  { %367 = vrot.lane.b32.xlu0 %v1792_v46, %s2046_s3 }
 0x142   :  { %v1794_v47 = vpop.eup %1793 }
 0x143   :  { %369 = vrot.lane.b32.xlu0 %v1794_v47, %s2046_s3  ;;  %v1796_v50 = vpop.eup %1795 }
 0x144   :  { %v355_v51 = vadd.f32 1.0, %v1796_v50  ;;  %v1798_v52 = vpop.eup %1797 }
 0x145   :  { %v356_v53 = vadd.f32 1.0, %v1798_v52 }
 0x146   :  { %1799 = vrcp.f32 %v355_v51 }
 0x147   :  { %1801 = vrcp.f32 %v356_v53  ;;  %v81_v53 = vld [vmem:[#allocation4 + $0x10] sm:$0xff] }
 0x148   :  { %1604 = vmatmul.mubr.msk.f32.gmra.mrb[4].mxu0 %vm103_vm0, %v81_v53 }
 0x149   :  { %210 = vmatprep.mubr.f32.mxu0 %v2045_v0 }
 0x150   :  { %v1800_v54 = vpop.eup %1799 }
 0x151   :  { %v1802_v57 = vpop.eup %1801  ;;  %v363_v60 = vmul.f32 0.0, %v1800_v54 }
 0x152   :  { %v364_v63 = vmul.f32 0.0, %v1802_v57 }
 0x1b0   :  { %v368_v55 = vpop.permute.xlu0 %367 }
 0x1b1   :  { %v373_v56 = vmul.f32 %v1800_v54, %v368_v55 }
 0x1b3   :  { %377 = vrot.lane.b32.xlu1 %v373_v56, %s2047_s24 }
 0x1b5   :  { %v370_v58 = vpop.permute.xlu0 %369 }
 0x1b6   :  { %v374_v59 = vmul.f32 %v1802_v57, %v370_v58 }
 0x1b8   :  { %379 = vrot.lane.b32.xlu1 %v374_v59, %s2047_s24 }
 0x225   :  { %v378_v61 = vpop.permute.xlu1 %377 }
 0x226   :  { %v2212_v62 = vadd.f32 %v378_v61, %v363_v60  ;;  %v206_v60 = vpop.f32.mrb[4].mxu0 }
 0x228   :  { %1803 = vtanh.f32 %v2212_v62 }
 0x22a   :  { %v380_v1 = vpop.permute.xlu1 %379 }
 0x22b   :  { %v2215_v2 = vadd.f32 %v380_v1, %v364_v63  ;;  %v2271_v63 = vpop.f32.mrb[5].mxu0  ;;  %v207_v1 = vadd.f32 %v206_v60, %v2200_v33 }
 0x22d   :  { %1805 = vtanh.f32 %v2215_v2 }
 0x232   :  { %v1804_v4 = vpop.eup %1803 }
 0x233   :  { %389 = vrot.lane.b32.xlu0 %v1804_v4, %s2046_s3 }
 0x237   :  { %v1806_v5 = vpop.eup %1805 }
 0x238   :  { %391 = vrot.lane.b32.xlu1 %v1806_v5, %s2046_s3  ;;  %v227_v5 = vadd.f32 %v2189_v27, %v2205_v41 }
 0x2a5   :  { %v390_v6 = vpop.permute.xlu0 %389 }
 0x2a6   :  { %v395_v7 = vmul.f32 %v1800_v54, %v390_v6 }
 0x2a8   :  { %398 = vrot.lane.b32.xlu0 %v395_v7, %s2047_s24 }
 0x2aa   :  { %v392_v8 = vpop.permute.xlu1 %391 }
 0x2ab   :  { %v2223_v9 = vmul.f32 %v1802_v57, %v392_v8 }
 0x2ad   :  { %409 = vrot.lane.b32.xlu1 %v2223_v9, %s2047_s24 }
 0x31a   :  { %v399_v12 = vpop.permute.xlu0 %398 }
 0x31b   :  { %401 = vst.msk [vmem:[#allocation3] sm:$0xff] %vm265_vm1, %v399_v12  ;;  %1612 = vmatmul.mubr.msk.f32.vlgmr.msra.gmra.mrb[10].mxu1 %vm265_vm1, %v399_v12 }
 0x31c   :  { %484 = vmatprep.mubr.f32.mxu1 %v2045_v0  ;;  %1716 = vmatpush1.bf16.msra.mxu1 %v2155_v15 }
 0x31d   :  { %1718 = vmatprep.subr.bf16.mxu1 %v2158_v16 }
 0x31f   :  { %v410_v13 = vpop.permute.xlu1 %409 }
 0x320   :  { %1613 = vmatmul.mubr.msk.f32.gmra.mrb[12].mxu1 %vm265_vm1, %v410_v13 }
 0x321   :  { %1720 = vmatpush1.bf16.msra.mxu1 %v2165_v21  ;;  %626 = vmatprep.mubr.f32.mxu1 %v2045_v0 }
 0x322   :  { %1722 = vmatprep.subr.bf16.mxu1 %v2153_v11 }
 0x3ee   :  { %v481_v18 = vpop.f32.mrb[10].mxu1 }
 0x3ef   :  { %v492_v19 = vadd.f32 %v481_v18, %v201_v17  ;;  %v483_v20 = vpop.f32.mrb[11].mxu1 }
 0x3f1   :  { %1807 = vtanh.f32 %v492_v19  ;;  %v1614_v35 = vmul.f32 -1.442695, %v492_v19 }
 0x3f3   :  { %v486_v23 = vpop.f32.mrb[12].mxu1 }
 0x3f4   :  { %v487_v24 = vpop.f32.mrb[13].mxu1 }
 0x3f5   :  { %v495_v26 = vadd.f32 %v487_v24, %v233_v22 }
 0x3f7   :  { %1809 = vtanh.f32 %v495_v26  ;;  %v1615_v36 = vmul.f32 -1.442695, %v495_v26 }
 0x3f8   :  { %1811 = vpow2.f32 %v1614_v35 }
 0x3f9   :  { %1813 = vpow2.f32 %v1615_v36 }
 0x3fb   :  { %v1808_v29 = vpop.eup %1807 }
 0x3fc   :  { %514 = vrot.lane.b32.xlu0 %v1808_v29, %s2046_s3 }
 0x401   :  { %v1810_v30 = vpop.eup %1809 }
 0x402   :  { %516 = vrot.lane.b32.xlu1 %v1810_v30, %s2046_s3  ;;  %v1812_v37 = vpop.eup %1811 }
 0x403   :  { %v502_v38 = vadd.f32 1.0, %v1812_v37  ;;  %v1814_v39 = vpop.eup %1813 }
 0x404   :  { %v503_v40 = vadd.f32 1.0, %v1814_v39 }
 0x405   :  { %1815 = vrcp.f32 %v502_v38 }
 0x406   :  { %1817 = vrcp.f32 %v503_v40 }
 0x40f   :  { %v1816_v32 = vpop.eup %1815 }
 0x410   :  { %v1818_v44 = vpop.eup %1817  ;;  %v510_v47 = vmul.f32 %v1816_v32, %v2212_v62 }
 0x411   :  { %v511_v50 = vmul.f32 %v1818_v44, %v2215_v2 }
 0x46e   :  { %v515_v42 = vpop.permute.xlu0 %514 }
 0x46f   :  { %v520_v43 = vmul.f32 %v1816_v32, %v515_v42 }
 0x471   :  { %524 = vrot.lane.b32.xlu0 %v520_v43, %s2047_s24 }
 0x474   :  { %v517_v45 = vpop.permute.xlu1 %516 }
 0x475   :  { %v521_v46 = vmul.f32 %v1818_v44, %v517_v45 }
 0x477   :  { %526 = vrot.lane.b32.xlu1 %v521_v46, %s2047_s24 }
 0x4e3   :  { %v525_v48 = vpop.permute.xlu0 %524 }
 0x4e4   :  { %v2246_v49 = vadd.f32 %v525_v48, %v510_v47 }
 0x4e6   :  { %1819 = vtanh.f32 %v2246_v49 }
 0x4e9   :  { %v527_v51 = vpop.permute.xlu1 %526 }
 0x4ea   :  { %v2250_v52 = vadd.f32 %v527_v51, %v511_v50 }
 0x4ec   :  { %1821 = vtanh.f32 %v2250_v52 }
 0x4f0   :  { %v1820_v54 = vpop.eup %1819 }
 0x4f1   :  { %536 = vrot.lane.b32.xlu0 %v1820_v54, %s2046_s3 }
 0x4f6   :  { %v1822_v55 = vpop.eup %1821 }
 0x4f7   :  { %538 = vrot.lane.b32.xlu1 %v1822_v55, %s2046_s3 }
 0x563   :  { %v537_v56 = vpop.permute.xlu0 %536 }
 0x564   :  { %v542_v57 = vmul.f32 %v1816_v32, %v537_v56  ;;  %v82_v32 = vld [vmem:[#allocation4 + $0x18] sm:$0xff] }
 0x565   :  { %1605 = vmatmul.mubr.msk.f32.gmra.mrb[6].mxu0 %vm103_vm0, %v82_v32 }
 0x566   :  { %545 = vrot.lane.b32.xlu0 %v542_v57, %s2047_s24  ;;  %216 = vmatprep.mubr.f32.mxu0 %v2045_v0 }
 0x569   :  { %v539_v58 = vpop.permute.xlu1 %538 }
 0x56a   :  { %v2258_v59 = vmul.f32 %v1818_v44, %v539_v58  ;;  %v83_v44 = vld [vmem:[#allocation4 + $0x20] sm:$0xff] }
 0x56b   :  { %1606 = vmatmul.mubr.msk.f32.gmra.mrb[8].mxu0 %vm103_vm0, %v83_v44 }
 0x56c   :  { %556 = vrot.lane.b32.xlu1 %v2258_v59, %s2047_s24  ;;  %920 = vmatprep.mubr.f32.mxu0 %v2045_v0 }
 0x5d8   :  { %v546_v61 = vpop.permute.xlu0 %545 }
 0x5d9   :  { %549 = vst.msk [vmem:[#allocation3 + $0x8] sm:$0xff] %vm265_vm1, %v546_v61  ;;  %1616 = vmatmul.mubr.msk.f32.vlgmr.msra.gmra.mrb[14].mxu1 %vm265_vm1, %v546_v61 }
 0x5da   :  { %631 = vmatprep.mubr.f32.mxu1 %v2045_v0  ;;  %1724 = vmatpush1.bf16.msra.mxu1 %v2155_v15 }
 0x5db   :  { %1726 = vmatprep.subr.bf16.mxu1 %v2158_v16 }
 0x5de   :  { %v557_v62 = vpop.permute.xlu1 %556  ;;  %1728 = vmatpush1.bf16.msra.mxu1 %v2165_v21 }
 0x5df   :  { %1617 = vmatmul.mubr.msk.f32.gmra.mrb[16].mxu1 %vm265_vm1, %v557_v62  ;;  %1738 = vmatprep.subr.bf16.mxu1 %v2153_v11 }
 0x5e0   :  { %773 = vmatprep.mubr.f32.mxu1 %v2045_v0 }
 0x6ac   :  { %v628_v2 = vpop.f32.mrb[14].mxu1 }
 0x6ad   :  { %v639_v3 = vadd.f32 %v628_v2, %v207_v1  ;;  %v630_v4 = vpop.f32.mrb[15].mxu1 }
 0x6af   :  { %1823 = vtanh.f32 %v639_v3  ;;  %v1618_v13 = vmul.f32 -1.442695, %v639_v3 }
 0x6b2   :  { %v633_v6 = vpop.f32.mrb[16].mxu1 }
 0x6b3   :  { %v634_v7 = vpop.f32.mrb[17].mxu1 }
 0x6b4   :  { %v642_v8 = vadd.f32 %v634_v7, %v227_v5 }
 0x6b6   :  { %1825 = vtanh.f32 %v642_v8  ;;  %v1619_v17 = vmul.f32 -1.442695, %v642_v8 }
 0x6b7   :  { %1827 = vpow2.f32 %v1618_v13 }
 0x6b8   :  { %1829 = vpow2.f32 %v1619_v17 }
 0x6b9   :  { %v1824_v10 = vpop.eup %1823 }
 0x6ba   :  { %661 = vrot.lane.b32.xlu0 %v1824_v10, %s2046_s3 }
 0x6c0   :  { %v1826_v12 = vpop.eup %1825 }
 0x6c1   :  { %663 = vrot.lane.b32.xlu1 %v1826_v12, %s2046_s3  ;;  %v1828_v18 = vpop.eup %1827 }
 0x6c2   :  { %v649_v19 = vadd.f32 1.0, %v1828_v18  ;;  %v1830_v20 = vpop.eup %1829 }
 0x6c3   :  { %v650_v22 = vadd.f32 1.0, %v1830_v20 }
 0x6c4   :  { %1831 = vrcp.f32 %v649_v19 }
 0x6c5   :  { %1833 = vrcp.f32 %v650_v22 }
 0x6ce   :  { %v1832_v27 = vpop.eup %1831 }
 0x6cf   :  { %v1834_v26 = vpop.eup %1833  ;;  %v657_v35 = vmul.f32 %v1832_v27, %v2246_v49  ;;  %v212_v49 = vpop.f32.mrb[6].mxu0 }
 0x6d0   :  { %v658_v38 = vmul.f32 %v1834_v26, %v2250_v52  ;;  %v2308_v52 = vpop.f32.mrb[7].mxu0  ;;  %v213_v55 = vadd.f32 %v212_v49, %v2200_v33 }
 0x6d1   :  { %v218_v53 = vpop.f32.mrb[8].mxu0 }
 0x6d2   :  { %v220_v54 = vpop.f32.mrb[9].mxu0  ;;  %v219_v32 = vadd.f32 %v218_v53, %v2200_v33 }
 0x6d3   :  { %v221_v60 = vadd.f32 %v220_v54, %v2205_v41 }
 0x72c   :  { %v662_v23 = vpop.permute.xlu0 %661 }
 0x72d   :  { %v667_v24 = vmul.f32 %v1832_v27, %v662_v23 }
 0x72f   :  { %671 = vrot.lane.b32.xlu0 %v667_v24, %s2047_s24 }
 0x733   :  { %v664_v29 = vpop.permute.xlu1 %663 }
 0x734   :  { %v668_v30 = vmul.f32 %v1834_v26, %v664_v29 }
 0x736   :  { %673 = vrot.lane.b32.xlu1 %v668_v30, %s2047_s24 }
 0x7a1   :  { %v672_v36 = vpop.permute.xlu0 %671 }
 0x7a2   :  { %v2281_v37 = vadd.f32 %v672_v36, %v657_v35 }
 0x7a4   :  { %1835 = vtanh.f32 %v2281_v37 }
 0x7a8   :  { %v674_v39 = vpop.permute.xlu1 %673 }
 0x7a9   :  { %v2285_v40 = vadd.f32 %v674_v39, %v658_v38 }
 0x7ab   :  { %1837 = vtanh.f32 %v2285_v40 }
 0x7ae   :  { %v1836_v42 = vpop.eup %1835 }
 0x7af   :  { %683 = vrot.lane.b32.xlu0 %v1836_v42, %s2046_s3 }
 0x7b5   :  { %v1838_v43 = vpop.eup %1837 }
 0x7b6   :  { %685 = vrot.lane.b32.xlu1 %v1838_v43, %s2046_s3 }
 0x821   :  { %v684_v45 = vpop.permute.xlu0 %683 }
 0x822   :  { %v689_v46 = vmul.f32 %v1832_v27, %v684_v45  ;;  %v215_v45 = vadd.f32 %v2308_v52, %v2205_v41 }
 0x824   :  { %692 = vrot.lane.b32.xlu0 %v689_v46, %s2047_s24 }
 0x828   :  { %v686_v47 = vpop.permute.xlu1 %685 }
 0x829   :  { %v2295_v48 = vmul.f32 %v1834_v26, %v686_v47 }
 0x82b   :  { %703 = vrot.lane.b32.xlu1 %v2295_v48, %s2047_s24 }
 0x896   :  { %v693_v50 = vpop.permute.xlu0 %692 }
 0x897   :  { %696 = vst.msk [vmem:[#allocation3 + $0x10] sm:$0xff] %vm265_vm1, %v693_v50  ;;  %1620 = vmatmul.mubr.msk.f32.vlgmr.msra.gmra.mrb[18].mxu1 %vm265_vm1, %v693_v50 }
 0x898   :  { %778 = vmatprep.mubr.f32.mxu1 %v2045_v0  ;;  %1740 = vmatpush1.bf16.msra.mxu1 %v2155_v15 }
 0x899   :  { %1742 = vmatprep.subr.bf16.mxu1 %v2158_v16 }
 0x89c   :  { %1744 = vmatpush1.bf16.msra.mxu1 %v2165_v21 }
 0x89d   :  { %v704_v51 = vpop.permute.xlu1 %703  ;;  %1754 = vmatprep.subr.bf16.mxu1 %v2153_v11 }
 0x89e   :  { %1621 = vmatmul.mubr.msk.f32.gmra.mrb[20].mxu1 %vm265_vm1, %v704_v51 }
 0x89f   :  { %1063 = vmatprep.mubr.f32.mxu1 %v2045_v0 }
 0x96a   :  { %v775_v56 = vpop.f32.mrb[18].mxu1 }
 0x96b   :  { %v786_v57 = vadd.f32 %v775_v56, %v213_v55  ;;  %v777_v58 = vpop.f32.mrb[19].mxu1 }
 0x96d   :  { %1839 = vtanh.f32 %v786_v57  ;;  %v1622_v3 = vmul.f32 -1.442695, %v786_v57 }
 0x971   :  { %v780_v61 = vpop.f32.mrb[20].mxu1 }
 0x972   :  { %v781_v62 = vpop.f32.mrb[21].mxu1 }
 0x973   :  { %v789_v1 = vadd.f32 %v781_v62, %v221_v60 }
 0x975   :  { %1841 = vtanh.f32 %v789_v1  ;;  %v1623_v4 = vmul.f32 -1.442695, %v789_v1 }
 0x976   :  { %1843 = vpow2.f32 %v1622_v3 }
 0x977   :  { %v1840_v11 = vpop.eup %1839  ;;  %1845 = vpow2.f32 %v1623_v4 }
 0x978   :  { %808 = vrot.lane.b32.xlu0 %v1840_v11, %s2046_s3 }
 0x97f   :  { %v1842_v2 = vpop.eup %1841 }
 0x980   :  { %810 = vrot.lane.b32.xlu1 %v1842_v2, %s2046_s3  ;;  %v1844_v5 = vpop.eup %1843 }
 0x981   :  { %v796_v6 = vadd.f32 1.0, %v1844_v5  ;;  %v1846_v7 = vpop.eup %1845 }
 0x982   :  { %v797_v8 = vadd.f32 1.0, %v1846_v7 }
 0x983   :  { %1847 = vrcp.f32 %v796_v6 }
 0x984   :  { %1849 = vrcp.f32 %v797_v8 }
 0x98d   :  { %v1848_v10 = vpop.eup %1847 }
 0x98e   :  { %v1850_v17 = vpop.eup %1849  ;;  %v804_v20 = vmul.f32 %v1848_v10, %v2281_v37 }
 0x98f   :  { %v805_v23 = vmul.f32 %v1850_v17, %v2285_v40 }
 0x9ea   :  { %v809_v12 = vpop.permute.xlu0 %808 }
 0x9eb   :  { %v814_v13 = vmul.f32 %v1848_v10, %v809_v12 }
 0x9ed   :  { %818 = vrot.lane.b32.xlu0 %v814_v13, %s2047_s24 }
 0x9f2   :  { %v811_v18 = vpop.permute.xlu1 %810 }
 0x9f3   :  { %v815_v19 = vmul.f32 %v1850_v17, %v811_v18 }
 0x9f5   :  { %820 = vrot.lane.b32.xlu1 %v815_v19, %s2047_s24 }
 0xa5f   :  { %v819_v22 = vpop.permute.xlu0 %818 }
 0xa60   :  { %v824_v27 = vadd.f32 %v819_v22, %v804_v20  ;;  %v225_v22 = vadd.f32 %v2187_v25, %v2200_v33 }
 0xa62   :  { %1851 = vtanh.f32 %v824_v27 }
 0xa67   :  { %v821_v24 = vpop.permute.xlu1 %820 }
 0xa68   :  { %v825_v26 = vadd.f32 %v821_v24, %v805_v23 }
 0xa6a   :  { %1853 = vtanh.f32 %v825_v26 }
 0xa6c   :  { %v1852_v29 = vpop.eup %1851 }
 0xa6d   :  { %830 = vrot.lane.b32.xlu0 %v1852_v29, %s2046_s3 }
 0xa74   :  { %v1854_v30 = vpop.eup %1853 }
 0xa75   :  { %832 = vrot.lane.b32.xlu1 %v1854_v30, %s2046_s3 }
 0xadf   :  { %v831_v35 = vpop.permute.xlu0 %830 }
 0xae0   :  { %v836_v36 = vmul.f32 %v1848_v10, %v831_v35 }
 0xae2   :  { %839 = vrot.lane.b32.xlu0 %v836_v36, %s2047_s24 }
 0xae7   :  { %v833_v38 = vpop.permute.xlu1 %832 }
 0xae8   :  { %v2321_v37 = vmul.f32 %v1850_v17, %v833_v38 }
 0xaea   :  { %850 = vrot.lane.b32.xlu1 %v2321_v37, %s2047_s24 }
 0xb54   :  { %v840_v39 = vpop.permute.xlu0 %839 }
 0xb55   :  { %843 = vst.msk [vmem:[#allocation3 + $0x18] sm:$0xff] %vm265_vm1, %v840_v39  ;;  %1624 = vmatmul.mubr.msk.f32.vlgmr.msra.gmra.mrb[10].mxu0 %vm265_vm1, %v840_v39 }
 0xb56   :  { %925 = vmatprep.mubr.f32.mxu0 %v2045_v0  ;;  %1748 = vmatpush1.bf16.msra.mxu0 %v2155_v15 }
 0xb57   :  { %1750 = vmatprep.subr.bf16.mxu0 %v2158_v16 }
 0xb5a   :  { %1752 = vmatpush1.bf16.msra.mxu0 %v2165_v21 }
 0xb5c   :  { %v851_v40 = vpop.permute.xlu1 %850 }
 0xb5d   :  { %1625 = vmatmul.mubr.msk.f32.gmra.mrb[12].mxu0 %vm265_vm1, %v851_v40 }
 0xb5e   :  { %1206 = vmatprep.mubr.f32.mxu0 %v2045_v0 }
 0xc28   :  { %v922_v42 = vpop.f32.mrb[10].mxu0 }
 0xc29   :  { %v932_v43 = vadd.f32 %v922_v42, %v219_v32  ;;  %v924_v44 = vpop.f32.mrb[11].mxu0 }
 0xc2b   :  { %1855 = vtanh.f32 %v932_v43  ;;  %v1626_v54 = vmul.f32 -1.442695, %v932_v43 }
 0xc30   :  { %v927_v46 = vpop.f32.mrb[12].mxu0 }
 0xc31   :  { %v928_v47 = vpop.f32.mrb[13].mxu0 }
 0xc32   :  { %v934_v49 = vadd.f32 %v928_v47, %v215_v45 }
 0xc34   :  { %1857 = vtanh.f32 %v934_v49  ;;  %v1627_v53 = vmul.f32 -1.442695, %v934_v49 }
 0xc35   :  { %v1856_v50 = vpop.eup %1855  ;;  %1859 = vpow2.f32 %v1626_v54 }
 0xc36   :  { %953 = vrot.lane.b32.xlu0 %v1856_v50, %s2046_s3  ;;  %1861 = vpow2.f32 %v1627_v53 }
 0xc3e   :  { %v1858_v51 = vpop.eup %1857 }
 0xc3f   :  { %955 = vrot.lane.b32.xlu1 %v1858_v51, %s2046_s3  ;;  %v1860_v55 = vpop.eup %1859 }
 0xc40   :  { %v941_v56 = vadd.f32 1.0, %v1860_v55  ;;  %v1862_v57 = vpop.eup %1861 }
 0xc41   :  { %v942_v58 = vadd.f32 1.0, %v1862_v57 }
 0xc42   :  { %1863 = vrcp.f32 %v941_v56 }
 0xc43   :  { %1865 = vrcp.f32 %v942_v58 }
 0xc4c   :  { %v1864_v52 = vpop.eup %1863 }
 0xc4d   :  { %v1866_v62 = vpop.eup %1865  ;;  %v949_v2 = vmul.f32 %v1864_v52, %v824_v27 }
 0xc4e   :  { %v950_v5 = vmul.f32 %v1866_v62, %v825_v26  ;;  %v209_v26 = vadd.f32 %v2271_v63, %v2205_v41 }
 0xca8   :  { %v954_v60 = vpop.permute.xlu0 %953 }
 0xca9   :  { %v959_v61 = vmul.f32 %v1864_v52, %v954_v60 }
 0xcab   :  { %963 = vrot.lane.b32.xlu0 %v959_v61, %s2047_s24 }
 0xcb1   :  { %v956_v1 = vpop.permute.xlu1 %955 }
 0xcb2   :  { %v960_v11 = vmul.f32 %v1866_v62, %v956_v1 }
 0xcb4   :  { %965 = vrot.lane.b32.xlu1 %v960_v11, %s2047_s24 }
 0xd1d   :  { %v964_v3 = vpop.permute.xlu0 %963 }
 0xd1e   :  { %v969_v4 = vadd.f32 %v964_v3, %v949_v2  ;;  %v203_v3 = vadd.f32 %v2236_v14, %v2205_v41 }
 0xd20   :  { %1867 = vtanh.f32 %v969_v4 }
 0xd26   :  { %v966_v6 = vpop.permute.xlu1 %965 }
 0xd27   :  { %v970_v7 = vadd.f32 %v966_v6, %v950_v5 }
 0xd29   :  { %1869 = vtanh.f32 %v970_v7 }
 0xd2a   :  { %v1868_v8 = vpop.eup %1867 }
 0xd2b   :  { %975 = vrot.lane.b32.xlu0 %v1868_v8, %s2046_s3 }
 0xd33   :  { %v1870_v10 = vpop.eup %1869 }
 0xd34   :  { %977 = vrot.lane.b32.xlu1 %v1870_v10, %s2046_s3 }
 0xd9d   :  { %v976_v12 = vpop.permute.xlu0 %975 }
 0xd9e   :  { %v981_v13 = vmul.f32 %v1864_v52, %v976_v12 }
 0xda0   :  { %984 = vrot.lane.b32.xlu0 %v981_v13, %s2047_s24 }
 0xda6   :  { %v978_v17 = vpop.permute.xlu1 %977 }
 0xda7   :  { %v2343_v18 = vmul.f32 %v1866_v62, %v978_v17  ;;  %v231_v62 = vadd.f32 %v2196_v31, %v2200_v33 }
 0xda9   :  { %993 = vrot.lane.b32.xlu1 %v2343_v18, %s2047_s24 }
 0xe12   :  { %v2347_v19 = vpop.permute.xlu0 %984 }
 0xe13   :  { %1628 = vmatmul.mubr.msk.f32.vlgmr.msra.gmra.mrb[22].mxu1 %vm265_vm1, %v2347_v19 }
 0xe14   :  { %1068 = vmatprep.mubr.f32.mxu1 %v2045_v0  ;;  %1756 = vmatpush1.bf16.msra.mxu1 %v2155_v15 }
 0xe15   :  { %1758 = vmatprep.subr.bf16.mxu1 %v2158_v16 }
 0xe18   :  { %1760 = vmatpush1.bf16.msra.mxu1 %v2165_v21 }
 0xe1b   :  { %v994_v20 = vpop.permute.xlu1 %993 }
 0xe1c   :  { %1629 = vmatmul.mubr.msk.f32.gmra.mrb[24].mxu1 %vm265_vm1, %v994_v20 }
 0xe1d   :  { %1349 = vmatprep.mubr.f32.mxu1 %v2045_v0 }
 0xee6   :  { %v1065_v27 = vpop.f32.mrb[22].mxu1 }
 0xee7   :  { %v1075_v23 = vadd.f32 %v1065_v27, %v225_v22  ;;  %v1067_v24 = vpop.f32.mrb[23].mxu1 }
 0xee9   :  { %1871 = vtanh.f32 %v1075_v23  ;;  %v1630_v35 = vmul.f32 -1.442695, %v1075_v23 }
 0xeef   :  { %v1070_v15 = vpop.f32.mrb[24].mxu1 }
 0xef0   :  { %v1071_v29 = vpop.f32.mrb[25].mxu1 }
 0xef1   :  { %v1077_v16 = vadd.f32 %v1071_v29, %v209_v26 }
 0xef3   :  { %v1872_v30 = vpop.eup %1871  ;;  %1873 = vtanh.f32 %v1077_v16  ;;  %v1631_v25 = vmul.f32 -1.442695, %v1077_v16 }
 0xef4   :  { %1096 = vrot.lane.b32.xlu0 %v1872_v30, %s2046_s3  ;;  %1875 = vpow2.f32 %v1630_v35 }
 0xef5   :  { %1877 = vpow2.f32 %v1631_v25 }
 0xefd   :  { %v1874_v21 = vpop.eup %1873 }
 0xefe   :  { %1098 = vrot.lane.b32.xlu1 %v1874_v21, %s2046_s3  ;;  %v1876_v36 = vpop.eup %1875 }
 0xeff   :  { %v1084_v38 = vadd.f32 1.0, %v1876_v36  ;;  %v1878_v39 = vpop.eup %1877 }
 0xf00   :  { %v1085_v40 = vadd.f32 1.0, %v1878_v39 }
 0xf01   :  { %1879 = vrcp.f32 %v1084_v38 }
 0xf02   :  { %1881 = vrcp.f32 %v1085_v40 }
 0xf0b   :  { %v1880_v63 = vpop.eup %1879 }
 0xf0c   :  { %v1882_v43 = vpop.eup %1881  ;;  %v1092_v46 = vmul.f32 %v1880_v63, %v969_v4 }
 0xf0d   :  { %v1093_v50 = vmul.f32 %v1882_v43, %v970_v7 }
 0xf66   :  { %v1097_v32 = vpop.permute.xlu0 %1096 }
 0xf67   :  { %v1102_v42 = vmul.f32 %v1880_v63, %v1097_v32 }
 0xf69   :  { %1106 = vrot.lane.b32.xlu0 %v1102_v42, %s2047_s24 }
 0xf70   :  { %v1099_v44 = vpop.permute.xlu1 %1098 }
 0xf71   :  { %v1103_v45 = vmul.f32 %v1882_v43, %v1099_v44 }
 0xf73   :  { %1108 = vrot.lane.b32.xlu1 %v1103_v45, %s2047_s24 }
 0xfdb   :  { %v1107_v47 = vpop.permute.xlu0 %1106 }
 0xfdc   :  { %v1112_v49 = vadd.f32 %v1107_v47, %v1092_v46  ;;  %v197_v47 = vadd.f32 %v2191_v28, %v2205_v41 }
 0xfde   :  { %1883 = vtanh.f32 %v1112_v49 }
 0xfe5   :  { %v1109_v51 = vpop.permute.xlu1 %1108 }
 0xfe6   :  { %v1113_v54 = vadd.f32 %v1109_v51, %v1093_v50 }
 0xfe8   :  { %v1884_v53 = vpop.eup %1883  ;;  %1885 = vtanh.f32 %v1113_v54 }
 0xfe9   :  { %1118 = vrot.lane.b32.xlu0 %v1884_v53, %s2046_s3 }
 0xff2   :  { %v1886_v55 = vpop.eup %1885 }
 0xff3   :  { %1120 = vrot.lane.b32.xlu1 %v1886_v55, %s2046_s3 }
0x105b   :  { %v1119_v56 = vpop.permute.xlu0 %1118 }
0x105c   :  { %v1124_v57 = vmul.f32 %v1880_v63, %v1119_v56 }
0x105e   :  { %1127 = vrot.lane.b32.xlu0 %v1124_v57, %s2047_s24 }
0x1065   :  { %v1121_v58 = vpop.permute.xlu1 %1120 }
0x1066   :  { %v2368_v52 = vmul.f32 %v1882_v43, %v1121_v58  ;;  %v237_v43 = vadd.f32 %v2202_v34, %v2200_v33 }
0x1068   :  { %1136 = vrot.lane.b32.xlu1 %v2368_v52, %s2047_s24 }
0x10d0   :  { %v2372_v60 = vpop.permute.xlu0 %1127 }
0x10d1   :  { %1632 = vmatmul.mubr.msk.f32.vlgmr.msra.gmra.mrb[14].mxu0 %vm265_vm1, %v2372_v60 }
0x10d2   :  { %1211 = vmatprep.mubr.f32.mxu0 %v2045_v0 }
0x10da   :  { %v1137_v61 = vpop.permute.xlu1 %1136 }
0x10db   :  { %1633 = vmatmul.mubr.msk.f32.gmra.mrb[16].mxu0 %vm265_vm1, %v1137_v61 }
0x11a4   :  { %v1208_v1 = vpop.f32.mrb[14].mxu0 }
0x11a5   :  { %v1218_v11 = vadd.f32 %v1208_v1, %v231_v62  ;;  %v1210_v2 = vpop.f32.mrb[15].mxu0 }
0x11a7   :  { %1887 = vtanh.f32 %v1218_v11  ;;  %v1634_v10 = vmul.f32 -1.442695, %v1218_v11 }
0x11ae   :  { %v1213_v4 = vpop.f32.mrb[16].mxu0 }
0x11af   :  { %v1214_v5 = vpop.f32.mrb[17].mxu0 }
0x11b0   :  { %v1220_v6 = vadd.f32 %v1214_v5, %v203_v3 }
0x11b1   :  { %v1888_v7 = vpop.eup %1887 }
0x11b2   :  { %1889 = vtanh.f32 %v1220_v6  ;;  %1239 = vrot.lane.b32.xlu0 %v1888_v7, %s2046_s3  ;;  %v1635_v31 = vmul.f32 -1.442695, %v1220_v6 }
0x11b3   :  { %1891 = vpow2.f32 %v1634_v10  ;;  %v1430_v10 = vld [vmem:[#allocation10] sm:$0xff] }
0x11b4   :  { %1893 = vpow2.f32 %v1635_v31  ;;  %v1431_v31 = vld [vmem:[#allocation10 + $0x8] sm:$0xff] }
0x11bc   :  { %v1890_v8 = vpop.eup %1889 }
0x11bd   :  { %1241 = vrot.lane.b32.xlu1 %v1890_v8, %s2046_s3  ;;  %v1892_v12 = vpop.eup %1891 }
0x11be   :  { %v1227_v13 = vadd.f32 1.0, %v1892_v12  ;;  %v1894_v17 = vpop.eup %1893  ;;  %v1432_v12 = vld [vmem:[#allocation10 + $0x10] sm:$0xff] }
0x11bf   :  { %v1228_v20 = vadd.f32 1.0, %v1894_v17  ;;  %v1433_v17 = vld [vmem:[#allocation10 + $0x18] sm:$0xff] }
0x11c0   :  { %1895 = vrcp.f32 %v1227_v13  ;;  %v1761_v13 = vpack.c.bf16 %v1431_v31, %v1430_v10 }
0x11c1   :  { %1897 = vrcp.f32 %v1228_v20  ;;  %v1765_v20 = vpack.c.bf16 %v1433_v17, %v1432_v12 }
0x11c2   :  { %1762 = vmatprep.subr.bf16.mxu0 %v1761_v13 }
0x11c3   :  { %1764 = vmatpush3.bf16.msra.mxu0 %v1761_v13 }
0x11c4   :  { %1766 = vmatprep.subr.bf16.mxu0 %v1765_v20 }
0x11c7   :  { %1768 = vmatpush3.bf16.msra.mxu0 %v1765_v20 }
0x11ca   :  { %v1896_v14 = vpop.eup %1895 }
0x11cb   :  { %v1898_v23 = vpop.eup %1897  ;;  %v1235_v15 = vmul.f32 %v1896_v14, %v1112_v49 }
0x11cc   :  { %v1236_v30 = vmul.f32 %v1898_v23, %v1113_v54 }
0x1224   :  { %v1240_v22 = vpop.permute.xlu0 %1239 }
0x1225   :  { %v1245_v27 = vmul.f32 %v1896_v14, %v1240_v22  ;;  %v1435_v22 = vld [vmem:[#allocation10 + $0x28] sm:$0xff] }
0x1227   :  { %1249 = vrot.lane.b32.xlu0 %v1245_v27, %s2047_s24 }
0x122f   :  { %v1242_v24 = vpop.permute.xlu1 %1241 }
0x1230   :  { %v1246_v26 = vmul.f32 %v1898_v23, %v1242_v24 }
0x1232   :  { %1251 = vrot.lane.b32.xlu1 %v1246_v26, %s2047_s24 }
0x1299   :  { %v1250_v29 = vpop.permute.xlu0 %1249 }
0x129a   :  { %v1255_v16 = vadd.f32 %v1250_v29, %v1235_v15 }
0x129c   :  { %1899 = vtanh.f32 %v1255_v16 }
0x12a4   :  { %v1252_v21 = vpop.permute.xlu1 %1251 }
0x12a5   :  { %v1256_v35 = vadd.f32 %v1252_v21, %v1236_v30 }
0x12a6   :  { %v1900_v25 = vpop.eup %1899 }
0x12a7   :  { %1901 = vtanh.f32 %v1256_v35  ;;  %1261 = vrot.lane.b32.xlu0 %v1900_v25, %s2046_s3 }
0x12b1   :  { %v1902_v36 = vpop.eup %1901 }
0x12b2   :  { %1263 = vrot.lane.b32.xlu1 %v1902_v36, %s2046_s3 }
0x1319   :  { %v1262_v38 = vpop.permute.xlu0 %1261 }
0x131a   :  { %v1267_v39 = vmul.f32 %v1896_v14, %v1262_v38  ;;  %v1434_v14 = vld [vmem:[#allocation10 + $0x20] sm:$0xff] }
0x131b   :  { %v1769_v27 = vpack.c.bf16 %v1435_v22, %v1434_v14 }
0x131c   :  { %1270 = vrot.lane.b32.xlu0 %v1267_v39, %s2047_s24 }
0x131d   :  { %1770 = vmatprep.subr.bf16.mxu0 %v1769_v27 }
0x131e   :  { %1772 = vmatpush3.bf16.msra.mxu0 %v1769_v27 }
0x1324   :  { %v1264_v40 = vpop.permute.xlu1 %1263 }
0x1325   :  { %v1268_v63 = vmul.f32 %v1898_v23, %v1264_v40  ;;  %v1436_v23 = vld [vmem:[#allocation10 + $0x30] sm:$0xff] }
0x1327   :  { %1279 = vrot.lane.b32.xlu1 %v1268_v63, %s2047_s24 }
0x138e   :  { %v2390_v32 = vpop.permute.xlu0 %1270 }
0x138f   :  { %1636 = vmatmul.mubr.msk.f32.vlgmr.msra.gmra.mrb[26].mxu1 %vm265_vm1, %v2390_v32 }
0x1390   :  { %1354 = vmatprep.mubr.f32.mxu1 %v2045_v0 }
0x1399   :  { %v1280_v42 = vpop.permute.xlu1 %1279 }
0x139a   :  { %1637 = vmatmul.mubr.msk.f32.gmra.mrb[28].mxu1 %vm265_vm1, %v1280_v42 }
0x1462   :  { %v1351_v44 = vpop.f32.mrb[26].mxu1 }
0x1463   :  { %v1361_v45 = vadd.f32 %v1351_v44, %v237_v43  ;;  %v1353_v46 = vpop.f32.mrb[27].mxu1 }
0x1465   :  { %1903 = vtanh.f32 %v1361_v45  ;;  %v1638_v53 = vmul.f32 -1.442695, %v1361_v45 }
0x146d   :  { %v1356_v49 = vpop.f32.mrb[28].mxu1 }
0x146e   :  { %v1357_v50 = vpop.f32.mrb[29].mxu1 }
0x146f   :  { %v1904_v51 = vpop.eup %1903  ;;  %v1363_v54 = vadd.f32 %v1357_v50, %v197_v47 }
0x1470   :  { %1382 = vrot.lane.b32.xlu1 %v1904_v51, %s2046_s3 }
0x1471   :  { %1905 = vtanh.f32 %v1363_v54  ;;  %v1639_v33 = vmul.f32 -1.442695, %v1363_v54 }
0x1472   :  { %1907 = vpow2.f32 %v1638_v53 }
0x1473   :  { %1909 = vpow2.f32 %v1639_v33 }
0x147b   :  { %v1906_v0 = vpop.eup %1905 }
0x147c   :  { %1384 = vrot.lane.b32.xlu0 %v1906_v0, %s2046_s3  ;;  %v1908_v34 = vpop.eup %1907 }
0x147d   :  { %v1370_v55 = vadd.f32 1.0, %v1908_v34  ;;  %v1910_v56 = vpop.eup %1909 }
0x147e   :  { %v1371_v57 = vadd.f32 1.0, %v1910_v56 }
0x147f   :  { %1911 = vrcp.f32 %v1370_v55 }
0x1480   :  { %1913 = vrcp.f32 %v1371_v57 }
0x1489   :  { %v1912_v28 = vpop.eup %1911 }
0x148a   :  { %v1914_v61 = vpop.eup %1913  ;;  %v1378_v11 = vmul.f32 %v1912_v28, %v1255_v16 }
0x148b   :  { %v1379_v4 = vmul.f32 %v1914_v61, %v1256_v35 }
0x14e2   :  { %v1383_v41 = vpop.permute.xlu1 %1382 }
0x14e3   :  { %v1388_v58 = vmul.f32 %v1912_v28, %v1383_v41 }
0x14e5   :  { %1392 = vrot.lane.b32.xlu1 %v1388_v58, %s2047_s24 }
0x14ee   :  { %v1385_v62 = vpop.permute.xlu0 %1384 }
0x14ef   :  { %v1389_v1 = vmul.f32 %v1914_v61, %v1385_v62 }
0x14f1   :  { %1394 = vrot.lane.b32.xlu0 %v1389_v1, %s2047_s24 }
0x1557   :  { %v1393_v2 = vpop.permute.xlu1 %1392 }
0x1558   :  { %v1398_v3 = vadd.f32 %v1393_v2, %v1378_v11 }
0x155a   :  { %1915 = vtanh.f32 %v1398_v3 }
0x1563   :  { %v1395_v5 = vpop.permute.xlu0 %1394 }
0x1564   :  { %v1916_v6 = vpop.eup %1915  ;;  %v1399_v7 = vadd.f32 %v1395_v5, %v1379_v4 }
0x1565   :  { %1404 = vrot.lane.b32.xlu1 %v1916_v6, %s2046_s3 }
0x1566   :  { %1917 = vtanh.f32 %v1399_v7 }
0x1569   :  { %1275 = vrot.lane.b32.xlu1 %v1268_v63, %s2046_s3 }
0x156d   :  { %989 = vrot.lane.b32.xlu1 %v2343_v18, %s2046_s3 }
0x1570   :  { %v1918_v8 = vpop.eup %1917 }
0x1571   :  { %1406 = vrot.lane.b32.xlu0 %v1918_v8, %s2046_s3  ;;  %698 = vrot.lane.b32.xlu1 %v2295_v48, %s2046_s3 }
0x1575   :  { %403 = vrot.lane.b32.xlu1 %v2223_v9, %s2046_s3  ;;  %v1437_v9 = vld [vmem:[#allocation10 + $0x38] sm:$0xff] }
0x1576   :  { %v1773_v24 = vpack.c.bf16 %v1437_v9, %v1436_v23 }
0x1578   :  { %1774 = vmatprep.subr.bf16.mxu0 %v1773_v24 }
0x1579   :  { %1776 = vmatpush3.bf16.msra.mxu0 %v1773_v24 }
0x15d7   :  { %v1405_v18 = vpop.permute.xlu1 %1404 }
0x15d8   :  { %v1410_v21 = vmul.f32 %v1912_v28, %v1405_v18 }
0x15db   :  { %v1276_v48 = vpop.permute.xlu1 %1275 }
0x15dc   :  { %1278 = vst.msk [vmem:[#allocation3 + $0x8] sm:$0xff] %vm407_vm2, %v1276_v48 }
0x15df   :  { %v990_v26 = vpop.permute.xlu1 %989 }
0x15e0   :  { %992 = vst.msk [vmem:[#allocation3 + $0x18] sm:$0xff] %vm407_vm2, %v990_v26 }
0x15e3   :  { %v1407_v15 = vpop.permute.xlu0 %1406  ;;  %v699_v29 = vpop.permute.xlu1 %698 }
0x15e4   :  { %v1411_v16 = vmul.f32 %v1914_v61, %v1407_v15  ;;  %702 = vst.msk [vmem:[#allocation3 + $0x28] sm:$0xff] %vm407_vm2, %v699_v29 }
0x15e5   :  { %1130 = vst.msk [vmem:[#allocation3 + $0x28] sm:$0xff] %vm265_vm1, %v2372_v60 }
0x15e6   :  { %1418 = vrot.lane.b32.xlu0 %v1411_v16, %s2046_s3 }
0x15e7   :  { %v404_v30 = vpop.permute.xlu1 %403  ;;  %v1425_v38 = vld [vmem:[#allocation3 + $0x18] sm:$0xff] }
0x15e8   :  { %408 = vst.msk [vmem:[#allocation3 + $0x38] sm:$0xff] %vm407_vm2, %v404_v30 }
0x15ea   :  { %1132 = vrot.lane.b32.xlu0 %v2368_v52, %s2046_s3 }
0x15ee   :  { %845 = vrot.lane.b32.xlu0 %v2321_v37, %s2046_s3  ;;  %v1423_v37 = vld [vmem:[#allocation3 + $0x8] sm:$0xff] }
0x15f2   :  { %551 = vrot.lane.b32.xlu0 %v2258_v59, %s2046_s3 }
0x15f6   :  { %1413 = vrot.lane.b32.xlu0 %v1410_v21, %s2047_s24 }
0x1658   :  { %v1419_v35 = vpop.permute.xlu0 %1418 }
0x1659   :  { %1421 = vst.msk [vmem:[#allocation3] sm:$0xff] %vm407_vm2, %v1419_v35 }
0x165c   :  { %v1133_v60 = vpop.permute.xlu0 %1132 }
0x165d   :  { %1135 = vst.msk [vmem:[#allocation3 + $0x10] sm:$0xff] %vm407_vm2, %v1133_v60 }
0x1660   :  { %v846_v25 = vpop.permute.xlu0 %845  ;;  %v1422_v36 = vld [vmem:[#allocation3] sm:$0xff] }
0x1661   :  { %849 = vst.msk [vmem:[#allocation3 + $0x20] sm:$0xff] %vm407_vm2, %v846_v25  ;;  %1681 = vmatprep.mubr.msk.f32.mxu0 %vm1445_vm3, %v1422_v36 }
0x1662   :  { %987 = vst.msk [vmem:[#allocation3 + $0x20] sm:$0xff] %vm265_vm1, %v2347_v19  ;;  %1682 = vmatmul.mubr.msk.f32.vlgmr.msra.gmra.mrb[18].mxu0 %vm1445_vm3, %v1423_v37  ;;  %v1427_v19 = vld [vmem:[#allocation3 + $0x28] sm:$0xff] }
0x1664   :  { %v552_v59 = vpop.permute.xlu0 %551  ;;  %v1424_v52 = vld [vmem:[#allocation3 + $0x10] sm:$0xff] }
0x1665   :  { %555 = vst.msk [vmem:[#allocation3 + $0x30] sm:$0xff] %vm407_vm2, %v552_v59  ;;  %1684 = vmatprep.mubr.msk.f32.mxu0 %vm1445_vm3, %v1424_v52 }
0x1666   :  { %1273 = vst.msk [vmem:[#allocation3 + $0x30] sm:$0xff] %vm265_vm1, %v2390_v32  ;;  %1685 = vmatmul.mubr.msk.f32.gmra.mrb[20].mxu0 %vm1445_vm3, %v1425_v38  ;;  %v1640_v32 = vld [vmem:[%s2467_s5] ss:$0 sm:$0xff]  ;;  %s1588_s5 = sshll.u32 %s2048_s27, 4  ;;  %s1589_s5 = int_to_ptr.vmem [resolvable:$true] %s1588_s5 }
0x1667   :  { %s2007_s28 = scalar_lea.vmem %s1589_s5, 1024  ;;  %p2012_p5 = scmp.lt.s32.totalorder %s1589_s5, %s1589_s5 }
0x1668   :  { %v1414_v39 = vpop.permute.xlu0 %1413  ;;  %p2008_p4 = scmp.ne.s32.totalorder %s1589_s5, %s2007_s28  ;;  %p2013_p6 = scmp.lt.s32.totalorder %s2007_s28, %s2007_s28 }
0x1669   :  { %1416 = vst.msk [vmem:[#allocation3 + $0x38] sm:$0xff] %vm265_vm1, %v1414_v39  ;;  %v1426_v40 = vld [vmem:[#allocation3 + $0x20] sm:$0xff] }
0x166a   :  { %1687 = vmatprep.mubr.msk.f32.mxu0 %vm1445_vm3, %v1426_v40  ;;  %p2014_p7 = por %p2013_p6, %p2012_p5 }
0x166b   :  { %1688 = vmatmul.mubr.msk.f32.gmra.mrb[22].mxu0 %vm1445_vm3, %v1427_v19 }
0x166c   :  { %p2015_p8 = pnand %p2014_p7, %p2008_p4 }
0x166d   :  { %v1428_v63 = vld [vmem:[#allocation3 + $0x30] sm:$0xff] }
0x166e   :  { %1690 = vmatprep.mubr.msk.f32.mxu0 %vm1445_vm3, %v1428_v63 }
0x1670   :  { %v1429_v42 = vld [vmem:[#allocation3 + $0x38] sm:$0xff] }
0x1671   :  { %1691 = vmatmul.mubr.msk.f32.gmra.mrb[24].mxu0 %vm1445_vm3, %v1429_v42 }
0x1735   :  { %v1683_v43 = vpop.f32.mrb[18].mxu0 }
0x1736   :  { %v1542_v44 = vadd.f32 %v1683_v43, %v1640_v32  ;;  %v1536_v45 = vpop.f32.mrb[19].mxu0 }
0x1737   :  { %v1537_v46 = vadd.f32 %v1640_v32, %v1536_v45 }
0x1738   :  { %1576 = vst [vmem:[#allocation12 + $0x8] sm:$0xff] %v1542_v44 }
0x1739   :  { %1575 = vst [vmem:[#allocation12] sm:$0xff] %v1537_v46  ;;  %v1686_v47 = vpop.f32.mrb[20].mxu0 }
0x173a   :  { %v1552_v49 = vadd.f32 %v1686_v47, %v1640_v32  ;;  %v1546_v50 = vpop.f32.mrb[21].mxu0 }
0x173b   :  { %v1547_v51 = vadd.f32 %v1640_v32, %v1546_v50 }
0x173c   :  { %1578 = vst [vmem:[#allocation12 + $0x18] sm:$0xff] %v1552_v49 }
0x173d   :  { %1577 = vst [vmem:[#allocation12 + $0x10] sm:$0xff] %v1547_v51 }
0x173e   :  { %v1689_v54 = vpop.f32.mrb[22].mxu0 }
0x173f   :  { %v1562_v0 = vadd.f32 %v1689_v54, %v1640_v32  ;;  %v1556_v53 = vpop.f32.mrb[23].mxu0 }
0x1740   :  { %v1557_v33 = vadd.f32 %v1640_v32, %v1556_v53 }
0x1741   :  { %1580 = vst [vmem:[#allocation12 + $0x28] sm:$0xff] %v1562_v0 }
0x1742   :  { %1579 = vst [vmem:[#allocation12 + $0x20] sm:$0xff] %v1557_v33 }
0x1744   :  { %v1692_v34 = vpop.f32.mrb[24].mxu0 }
0x1745   :  { %v1572_v55 = vadd.f32 %v1692_v34, %v1640_v32  ;;  %v1566_v56 = vpop.f32.mrb[25].mxu0 }
0x1746   :  { %v1567_v57 = vadd.f32 %v1640_v32, %v1566_v56 }
0x1747   :  { %1582 = vst [vmem:[#allocation12 + $0x38] sm:$0xff] %v1572_v55 }
0x1748   :  { %1581 = vst [vmem:[#allocation12 + $0x30] sm:$0xff] %v1567_v57 }
0x1749   :  { %2018 = shalt.err (!%p2015_p8)
}
0x174a   :  { %s2019_s9 = scalar_lea.hbm %s2468_s6, 1024 }
0x174b   :  { %p2020_p9 = scmp.ne.s32.totalorder %s2468_s6, %s2019_s9  ;;  %p2023_p10 = scmp.lt.u32.totalorder %s2019_s9, %s2468_s6 }
0x174d   :  { %p2025_p11 = pnand %p2023_p10, %p2020_p9 }
0x174f   :  { %2028 = shalt.err (!%p2025_p11)
}
0x1750   :  { %1594 = dma.vmem_to_hbm [thread:$0]  %s1589_s5, 1024, %s2468_s6, [#allocation6], %s2041_s1, %s2041_s1, %s2042_s21  }
0x1751   :  { %2035 = dma.done.wait [#allocation6], 1024  }
0x1752   :  { %2036 = vsyncadd [#allocation6], 4294966272 }
0x1753   :  { %1598 = vsyncpa [#allocation5], 1 }
0x1754   :  { %1599 = vsyncpa [#allocation8], 1 }
0x1755   :  { %1600 = vsyncpa [#allocation11], 1 }
0x1756   :  { %1601 = vsyncpa [#allocation6], 1 }

</bundles_post_ra>
